<compile_context>
chip_gen: v7x
topology: tpu7x:2x2x1
jax: 0.10.0
libtpu: 0.0.40
codegen_flags: <defaults>
</compile_context>

<pallas_src>
import functools

import jax
import jax.numpy as jnp
from jax.experimental import pallas as pl
from jax.experimental.pallas import tpu as pltpu

IN_FEATURES = 28 * 28          # 784 (full minor dim of the flattened input)
HIDDEN = 512
OUT_FEATURES = 10
OUT_PAD = 128                  # lane-dense output width (multiple of 128)


def _mlp_kernel(x_ref, w1_ref, b1_ref, w2_ref, b2_ref, w3_ref, b3_ref, o_ref):
    cdt = w1_ref.dtype  # MXU compute dtype (bf16 fast path or f32 exact path)
    # Cast activations in-kernel (x arrives as f32 straight from HBM).
    x = x_ref[...].astype(cdt)
    # Layer 1: (TB, 784) @ (784, 512) + b1, ReLU   (f32 accumulation)
    h1 = jnp.dot(x, w1_ref[...], preferred_element_type=jnp.float32)
    h1 = jnp.maximum(h1 + b1_ref[...], 0.0)
    # Layer 2: (TB, 512) @ (512, 512) + b2, ReLU
    h2 = jnp.dot(h1.astype(cdt), w2_ref[...], preferred_element_type=jnp.float32)
    h2 = jnp.maximum(h2 + b2_ref[...], 0.0)
    # Layer 3: (TB, 512) @ (512, 128-padded) + b3  (cols 10..127 are zero)
    logits = jnp.dot(h2.astype(cdt), w3_ref[...], preferred_element_type=jnp.float32)
    o_ref[...] = (logits + b3_ref[...]).astype(o_ref.dtype)


def _round_up(x, m):
    return (x + m - 1) // m * m


def _pick_block_b(B):
    """Batch tile size.

    * small batches: one step, rounded to 16 rows (bf16 sublane packing).
    * big batches: 256/512/1024-row tiles; prefer an even number of grid steps
      so the 'parallel' axis splits evenly across v7x's two TensorCores.
    """
    if B < 256:
        return max(16, _round_up(B, 16))
    for bb in (1024, 512, 256):
        steps = pl.cdiv(B, bb)
        if steps >= 2 and steps % 2 == 0:
            return bb
    return 256


def prepare_params(params, compute_dtype=jnp.bfloat16):
    """One-time weight preparation: cast to the compute dtype and pad the last
    layer 10 -> 128 columns. Call once; reuse the result for every forward."""
    w1, b1, w2, b2, w3, b3 = params
    cdt = jnp.dtype(compute_dtype)
    w3_p = jnp.pad(w3, ((0, 0), (0, OUT_PAD - OUT_FEATURES)))
    b3_p = jnp.pad(b3, ((0, 0), (0, OUT_PAD - OUT_FEATURES)))
    return (
        w1.astype(cdt), b1.astype(jnp.float32),
        w2.astype(cdt), b2.astype(jnp.float32),
        w3_p.astype(cdt), b3_p.astype(jnp.float32),
    )


@functools.partial(jax.jit, static_argnames=("block_b",))
def _forward(x_nchw, prepared, block_b):
    """x_nchw: (B, 1, 28, 28) f32; prepared: output of prepare_params.
    Returns logits (B, 10) f32."""
    w1, b1, w2, b2, w3, b3 = prepared
    cdt = w1.dtype
    B = x_nchw.shape[0]
    assert block_b % 8 == 0
    B_pad = _round_up(B, block_b)

    # Glue: flatten exactly like nn.Flatten (start_dim=1, row-major). Only the
    # batch dim is padded (zeros); the 784 feature dim stays un-padded.
    x = x_nchw.reshape(B, -1)
    assert x.shape[1] == IN_FEATURES
    if B_pad != B:
        x = jnp.pad(x, ((0, B_pad - B), (0, 0)))

    grid = (B_pad // block_b,)

    # Weights/biases are grid-invariant (index_map always (0, 0)); single-
    # buffer them so they are not double-buffered in VMEM.
    resident = dict(pipeline_mode=pl.Buffered(1))

    w_itemsize = cdt.itemsize
    flops = 2 * B_pad * (IN_FEATURES * HIDDEN + HIDDEN * HIDDEN + HIDDEN * OUT_PAD)
    bytes_accessed = (
        B_pad * IN_FEATURES * 4                                            # x (f32)
        + (IN_FEATURES * HIDDEN + HIDDEN * HIDDEN + HIDDEN * OUT_PAD) * w_itemsize
        + (2 * HIDDEN + OUT_PAD) * 4                                       # biases
        + B_pad * OUT_PAD * w_itemsize)                                    # logits out

    out = pl.pallas_call(
        _mlp_kernel,
        out_shape=jax.ShapeDtypeStruct((B_pad, OUT_PAD), cdt),
        grid_spec=pltpu.PrefetchScalarGridSpec(
            num_scalar_prefetch=0,
            grid=grid,
            in_specs=[
                # batch-tiled activations (double-buffered by default)
                pl.BlockSpec((block_b, IN_FEATURES), lambda i: (i, 0)),
                # weights / biases: full-array, grid-invariant blocks
                pl.BlockSpec((IN_FEATURES, HIDDEN), lambda i: (0, 0), **resident),
                pl.BlockSpec((1, HIDDEN), lambda i: (0, 0), **resident),
                pl.BlockSpec((HIDDEN, HIDDEN), lambda i: (0, 0), **resident),
                pl.BlockSpec((1, HIDDEN), lambda i: (0, 0), **resident),
                pl.BlockSpec((HIDDEN, OUT_PAD), lambda i: (0, 0), **resident),
                pl.BlockSpec((1, OUT_PAD), lambda i: (0, 0), **resident),
            ],
            out_specs=pl.BlockSpec((block_b, OUT_PAD), lambda i: (i, 0)),
        ),
        compiler_params=pltpu.CompilerParams(
            dimension_semantics=("parallel",),
            vmem_limit_bytes=32 * 1024 * 1024,
        ),
        cost_estimate=pl.CostEstimate(
            flops=flops, transcendentals=0, bytes_accessed=bytes_accessed),
    )(x, w1, b1, w2, b2, w3, b3)

    # Un-pad: drop padded batch rows and the 118 zero logit columns; return f32.
    return out[:B, :OUT_FEATURES].astype(jnp.float32)


def neural_network_forward(x_nchw, params, block_b=None,
                           compute_dtype=jnp.bfloat16, prepared=None):
    """Convenience wrapper: prepares params if not already prepared."""
    if prepared is None:
        prepared = prepare_params(params, compute_dtype)
    if block_b is None:
        block_b = _pick_block_b(x_nchw.shape[0])
    return _forward(x_nchw, prepared, block_b)


def init_params(key):
    """Deterministic init matching torch.nn.Linear default (U(+-1/sqrt(fan_in)))."""
    k1, k2, k3, k4, k5, k6 = jax.random.split(key, 6)

    def lin(kw, kb, fan_in, fan_out):
        bound = 1.0 / jnp.sqrt(fan_in)
        w = jax.random.uniform(kw, (fan_in, fan_out), jnp.float32, -bound, bound)
        b = jax.random.uniform(kb, (1, fan_out), jnp.float32, -bound, bound)
        return w, b

    w1, b1 = lin(k1, k2, IN_FEATURES, HIDDEN)
    w2, b2 = lin(k3, k4, HIDDEN, HIDDEN)
    w3, b3 = lin(k5, k6, HIDDEN, OUT_FEATURES)
    return (w1, b1, w2, b2, w3, b3)


def _reference(x_nchw, params):
    w1, b1, w2, b2, w3, b3 = params
    x = x_nchw.reshape(x_nchw.shape[0], -1)
    h1 = jnp.maximum(x @ w1 + b1, 0.0)
    h2 = jnp.maximum(h1 @ w2 + b2, 0.0)
    return h2 @ w3 + b3


if __name__ == "__main__":
    key = jax.random.PRNGKey(0)
    kx, kp = jax.random.split(key)

    B = 8  # small batch; FashionMNIST images are (1, 28, 28)
    x = jax.random.normal(kx, (B, 1, 28, 28), dtype=jnp.float32)
    params = init_params(kp)
    ref = _reference(x, params)

    # Exact path (f32 on the MXU): tight tolerance vs. reference.
    prepared_f32 = prepare_params(params, jnp.float32)
    logits_f32 = jax.block_until_ready(
        neural_network_forward(x, params, compute_dtype=jnp.float32,
                               prepared=prepared_f32))
    assert logits_f32.shape == (B, OUT_FEATURES)
    assert jnp.allclose(logits_f32, ref, atol=1e-4, rtol=1e-4), "f32 mismatch"

    # Fast path (bf16 weights/activations, f32 accumulation, bf16 writeback).
    prepared_bf16 = prepare_params(params, jnp.bfloat16)
    logits_bf16 = jax.block_until_ready(
        neural_network_forward(x, params, prepared=prepared_bf16))
    assert logits_bf16.shape == (B, OUT_FEATURES)
    assert jnp.allclose(logits_bf16, ref, atol=5e-2, rtol=5e-2), "bf16 mismatch"

    print("KERNEL_OK")
</pallas_src>

<mosaic_0001>
module attributes {stable_mosaic.version = 11 : i64} {
  func.func @_mlp_kernel(%arg0: i32, %arg1: memref<16x784xf32, #tpu.memory_space<vmem>>, %arg2: memref<784x512xf32, #tpu.memory_space<vmem>>, %arg3: memref<1x512xf32, #tpu.memory_space<vmem>>, %arg4: memref<512x512xf32, #tpu.memory_space<vmem>>, %arg5: memref<1x512xf32, #tpu.memory_space<vmem>>, %arg6: memref<512x128xf32, #tpu.memory_space<vmem>>, %arg7: memref<1x128xf32, #tpu.memory_space<vmem>>, %arg8: memref<16x128xf32, #tpu.memory_space<vmem>>) attributes {dimension_semantics = [#tpu.dimension_semantics<parallel>], iteration_bounds = array<i64: 1>, scalar_prefetch = 0 : i64, scratch_operands = 0 : i64, tpu.core_type = #tpu.core_type<tc>, window_params = [{transform_indices = @transform_0, window_bounds = array<i64: 16, 784>}, {pipeline_mode = #tpu.pipeline_mode<synchronous>, transform_indices = @transform_1, window_bounds = array<i64: 784, 512>}, {pipeline_mode = #tpu.pipeline_mode<synchronous>, transform_indices = @transform_2, window_bounds = array<i64: 1, 512>}, {pipeline_mode = #tpu.pipeline_mode<synchronous>, transform_indices = @transform_3, window_bounds = array<i64: 512, 512>}, {pipeline_mode = #tpu.pipeline_mode<synchronous>, transform_indices = @transform_4, window_bounds = array<i64: 1, 512>}, {pipeline_mode = #tpu.pipeline_mode<synchronous>, transform_indices = @transform_5, window_bounds = array<i64: 512, 128>}, {pipeline_mode = #tpu.pipeline_mode<synchronous>, transform_indices = @transform_6, window_bounds = array<i64: 1, 128>}, {transform_indices = @transform_7, window_bounds = array<i64: 16, 128>}]} {
    %c0 = arith.constant 0 : index
    %c0_0 = arith.constant 0 : index
    %0 = vector.load %arg1[%c0, %c0_0] : memref<16x784xf32, #tpu.memory_space<vmem>>, vector<16x784xf32>
    %c0_1 = arith.constant 0 : index
    %c0_2 = arith.constant 0 : index
    %1 = vector.load %arg2[%c0_1, %c0_2] : memref<784x512xf32, #tpu.memory_space<vmem>>, vector<784x512xf32>
    %cst = arith.constant dense<0.000000e+00> : vector<16x512xf32>
    %2 = tpu.matmul %0, %1, %cst {dimension_numbers = #tpu.dot_dimension_numbers<[1], [0], [0], [1], [0, 0, 1, 1], [], []>} : vector<16x784xf32>, vector<784x512xf32>, vector<16x512xf32> -> vector<16x512xf32>
    %c0_3 = arith.constant 0 : index
    %c0_4 = arith.constant 0 : index
    %3 = vector.load %arg3[%c0_3, %c0_4] : memref<1x512xf32, #tpu.memory_space<vmem>>, vector<1x512xf32>
    %4 = vector.broadcast %3 : vector<1x512xf32> to vector<16x512xf32>
    %5 = arith.addf %2, %4 : vector<16x512xf32>
    %cst_5 = arith.constant 0.000000e+00 : f32
    %6 = vector.broadcast %cst_5 : f32 to vector<16x512xf32>
    %7 = arith.maximumf %5, %6 : vector<16x512xf32>
    %c0_6 = arith.constant 0 : index
    %c0_7 = arith.constant 0 : index
    %8 = vector.load %arg4[%c0_6, %c0_7] : memref<512x512xf32, #tpu.memory_space<vmem>>, vector<512x512xf32>
    %cst_8 = arith.constant dense<0.000000e+00> : vector<16x512xf32>
    %9 = tpu.matmul %7, %8, %cst_8 {dimension_numbers = #tpu.dot_dimension_numbers<[1], [0], [0], [1], [0, 0, 1, 1], [], []>} : vector<16x512xf32>, vector<512x512xf32>, vector<16x512xf32> -> vector<16x512xf32>
    %c0_9 = arith.constant 0 : index
    %c0_10 = arith.constant 0 : index
    %10 = vector.load %arg5[%c0_9, %c0_10] : memref<1x512xf32, #tpu.memory_space<vmem>>, vector<1x512xf32>
    %11 = vector.broadcast %10 : vector<1x512xf32> to vector<16x512xf32>
    %12 = arith.addf %9, %11 : vector<16x512xf32>
    %cst_11 = arith.constant 0.000000e+00 : f32
    %13 = vector.broadcast %cst_11 : f32 to vector<16x512xf32>
    %14 = arith.maximumf %12, %13 : vector<16x512xf32>
    %c0_12 = arith.constant 0 : index
    %c0_13 = arith.constant 0 : index
    %15 = vector.load %arg6[%c0_12, %c0_13] : memref<512x128xf32, #tpu.memory_space<vmem>>, vector<512x128xf32>
    %cst_14 = arith.constant dense<0.000000e+00> : vector<16x128xf32>
    %16 = tpu.matmul %14, %15, %cst_14 {dimension_numbers = #tpu.dot_dimension_numbers<[1], [0], [0], [1], [0, 0, 1, 1], [], []>} : vector<16x512xf32>, vector<512x128xf32>, vector<16x128xf32> -> vector<16x128xf32>
    %c0_15 = arith.constant 0 : index
    %c0_16 = arith.constant 0 : index
    %17 = vector.load %arg7[%c0_15, %c0_16] : memref<1x128xf32, #tpu.memory_space<vmem>>, vector<1x128xf32>
    %18 = vector.broadcast %17 : vector<1x128xf32> to vector<16x128xf32>
    %19 = arith.addf %16, %18 : vector<16x128xf32>
    %c0_17 = arith.constant 0 : index
    %c0_18 = arith.constant 0 : index
    %20 = vector.load %arg8[%c0_17, %c0_18] : memref<16x128xf32, #tpu.memory_space<vmem>>, vector<16x128xf32>
    tpu.vector_store %arg8[%c0_17, %c0_18], %19 {strides = array<i32>} : memref<16x128xf32, #tpu.memory_space<vmem>>, vector<16x128xf32>,
    return
  }
  func.func @transform_0(%arg0: i32) -> (i32, i32) {
    %c0_i32 = arith.constant 0 : i32
    %c0_i32_0 = arith.constant 0 : i32
    return %arg0, %c0_i32 : i32, i32
  }
  func.func @transform_1(%arg0: i32) -> (i32, i32) {
    %c0_i32 = arith.constant 0 : i32
    %c0_i32_0 = arith.constant 0 : i32
    %c0_i32_1 = arith.constant 0 : i32
    return %c0_i32, %c0_i32_0 : i32, i32
  }
  func.func @transform_2(%arg0: i32) -> (i32, i32) {
    %c0_i32 = arith.constant 0 : i32
    %c0_i32_0 = arith.constant 0 : i32
    %c0_i32_1 = arith.constant 0 : i32
    return %c0_i32, %c0_i32_0 : i32, i32
  }
  func.func @transform_3(%arg0: i32) -> (i32, i32) {
    %c0_i32 = arith.constant 0 : i32
    %c0_i32_0 = arith.constant 0 : i32
    %c0_i32_1 = arith.constant 0 : i32
    return %c0_i32, %c0_i32_0 : i32, i32
  }
  func.func @transform_4(%arg0: i32) -> (i32, i32) {
    %c0_i32 = arith.constant 0 : i32
    %c0_i32_0 = arith.constant 0 : i32
    %c0_i32_1 = arith.constant 0 : i32
    return %c0_i32, %c0_i32_0 : i32, i32
  }
  func.func @transform_5(%arg0: i32) -> (i32, i32) {
    %c0_i32 = arith.constant 0 : i32
    %c0_i32_0 = arith.constant 0 : i32
    %c0_i32_1 = arith.constant 0 : i32
    return %c0_i32, %c0_i32_0 : i32, i32
  }
  func.func @transform_6(%arg0: i32) -> (i32, i32) {
    %c0_i32 = arith.constant 0 : i32
    %c0_i32_0 = arith.constant 0 : i32
    %c0_i32_1 = arith.constant 0 : i32
    return %c0_i32, %c0_i32_0 : i32, i32
  }
  func.func @transform_7(%arg0: i32) -> (i32, i32) {
    %c0_i32 = arith.constant 0 : i32
    %c0_i32_0 = arith.constant 0 : i32
    return %arg0, %c0_i32 : i32, i32
  }
}

</mosaic_0001>

<bundles_post_ra>
// kernel: _forward.1
= control target key start
LH: loop header
LB: loop body
LE: loop exit
PB: predicated region body
PF: predicated region fallthrough
CT: control target
= control target key end

     0   :  { %12 = vsyncpa [#allocation3], 0  ;;  %s3194_s0 = inlined_call_operand.vmem [shape: f32[16,784], index: 0, kind: input, shape index: {}]   ;;  %s3195_s1 = inlined_call_operand.hbm [shape: f32[784,512], index: 1, kind: input, shape index: {}]   ;;  %s3196_s2 = inlined_call_operand.hbm [shape: f32[1,512], index: 2, kind: input, shape index: {}]   ;;  %s3197_s3 = inlined_call_operand.hbm [shape: f32[512,512], index: 3, kind: input, shape index: {}]   ;;  %s3198_s4 = inlined_call_operand.hbm [shape: f32[1,512], index: 4, kind: input, shape index: {}]   ;;  %s3199_s5 = inlined_call_operand.hbm [shape: f32[512,128], index: 5, kind: input, shape index: {}]   ;;  %s3200_s6 = inlined_call_operand.hbm [shape: f32[1,128], index: 6, kind: input, shape index: {}]   ;;  %s3201_s7 = inlined_call_operand.vmem [shape: f32[16,128], index: 7, kind: output, shape index: {}]  }
   0x1   :  { %13 = vsyncpa [#allocation5], 0 }
   0x2   :  { %14 = vsyncpa [#allocation8], 0 }
   0x3   :  { %15 = vsyncpa [#allocation11], 0  ;;  %s2978_s24 = smov [#allocation4]   ;;  %s2979_s26 = smov [#allocation7]  }
   0x4   :  { %s36_s25 = sshll.u32 %s2978_s24, 4  ;;  %s58_s27 = sshll.u32 %s2979_s26, 4  ;;  %s37_s25 = int_to_ptr.vmem [resolvable:$true] %s36_s25  ;;  %s59_s27 = int_to_ptr.vmem [resolvable:$true] %s58_s27 }
   0x5   :  { %s2838_s30 = scalar_lea.hbm %s3196_s2, 64 }
   0x6   :  { %p2839_p0 = scmp.ne.s32.totalorder %s3196_s2, %s2838_s30  ;;  %p2842_p1 = scmp.lt.u32.totalorder %s2838_s30, %s3196_s2 }
   0x8   :  { %p2844_p2 = pnand %p2842_p1, %p2839_p0 }
   0xa   :  { %2847 = shalt.err (!%p2844_p2)
}
   0xb   :  { %s2848_s12 = scalar_lea.vmem %s37_s25, 64  ;;  %p2853_p4 = scmp.lt.s32.totalorder %s37_s25, %s37_s25 }
   0xc   :  { %p2849_p3 = scmp.ne.s32.totalorder %s37_s25, %s2848_s12  ;;  %p2854_p5 = scmp.lt.s32.totalorder %s2848_s12, %s2848_s12 }
   0xe   :  { %p2855_p6 = por %p2854_p5, %p2853_p4 }
  0x10   :  { %p2856_p7 = pnand %p2855_p6, %p2849_p3 }
  0x12   :  { %2859 = shalt.err (!%p2856_p7)
}
  0x13   :  { %39 = dma.hbm_to_vmem [thread:$0]  %s3196_s2, 64, %s37_s25, [#allocation5]  }
  0x14   :  { %s2860_s17 = scalar_lea.hbm %s3198_s4, 64 }
  0x15   :  { %p2861_p8 = scmp.ne.s32.totalorder %s3198_s4, %s2860_s17  ;;  %p2864_p9 = scmp.lt.u32.totalorder %s2860_s17, %s3198_s4 }
  0x17   :  { %p2866_p10 = pnand %p2864_p9, %p2861_p8 }
  0x19   :  { %2869 = shalt.err (!%p2866_p10)
}
  0x1a   :  { %s2870_s22 = scalar_lea.vmem %s59_s27, 64  ;;  %p2875_p12 = scmp.lt.s32.totalorder %s59_s27, %s59_s27 }
  0x1b   :  { %p2871_p11 = scmp.ne.s32.totalorder %s59_s27, %s2870_s22  ;;  %p2876_p13 = scmp.lt.s32.totalorder %s2870_s22, %s2870_s22 }
  0x1d   :  { %p2877_p0 = por %p2876_p13, %p2875_p12 }
  0x1f   :  { %p2878_p1 = pnand %p2877_p0, %p2871_p11 }
  0x21   :  { %2881 = shalt.err (!%p2878_p1)
}
  0x22   :  { %61 = dma.hbm_to_vmem [thread:$0]  %s3198_s4, 64, %s59_s27, [#allocation8]  }
  0x23   :  { %s2980_s24 = smov [#allocation2]   ;;  %s2882_s29 = scalar_lea.hbm %s3195_s1, 50176 }
  0x24   :  { %s23_s25 = sshll.u32 %s2980_s24, 4  ;;  %p2883_p2 = scmp.ne.s32.totalorder %s3195_s1, %s2882_s29  ;;  %s24_s25 = int_to_ptr.vmem [resolvable:$true] %s23_s25 }
  0x25   :  { %p2886_p3 = scmp.lt.u32.totalorder %s2882_s29, %s3195_s1 }
  0x27   :  { %p2888_p4 = pnand %p2886_p3, %p2883_p2 }
  0x29   :  { %2891 = shalt.err (!%p2888_p4)
}
  0x2a   :  { %s2892_s11 = scalar_lea.vmem %s24_s25, 50176  ;;  %p2897_p6 = scmp.lt.s32.totalorder %s24_s25, %s24_s25 }
  0x2b   :  { %p2893_p5 = scmp.ne.s32.totalorder %s24_s25, %s2892_s11  ;;  %p2898_p7 = scmp.lt.s32.totalorder %s2892_s11, %s2892_s11 }
  0x2d   :  { %p2899_p8 = por %p2898_p7, %p2897_p6 }
  0x2f   :  { %p2900_p9 = pnand %p2899_p8, %p2893_p5 }
  0x31   :  { %2903 = shalt.err (!%p2900_p9)
}
  0x32   :  { %s2981_s4 = smov 512   ;;  %s2982_s27 = smov 32  }
  0x33   :  { %29 = dma.hbm_to_vmem [thread:$0]  %s3195_s1, 50176, %s24_s25, [#allocation3], %s2981_s4, %s2981_s4, %s2982_s27  }
  0x34   :  { %s2983_s14 = smov [#allocation6]   ;;  %s2984_s16 = smov [#allocation9]  }
  0x35   :  { %s45_s15 = sshll.u32 %s2983_s14, 4  ;;  %s67_s17 = sshll.u32 %s2984_s16, 4  ;;  %s46_s15 = int_to_ptr.vmem [resolvable:$true] %s45_s15  ;;  %s68_s17 = int_to_ptr.vmem [resolvable:$true] %s67_s17 }
  0x36   :  { %s2904_s20 = scalar_lea.hbm %s3197_s3, 32768 }
  0x37   :  { %p2905_p10 = scmp.ne.s32.totalorder %s3197_s3, %s2904_s20  ;;  %p2908_p11 = scmp.lt.u32.totalorder %s2904_s20, %s3197_s3 }
  0x39   :  { %p2910_p12 = pnand %p2908_p11, %p2905_p10 }
  0x3b   :  { %2913 = shalt.err (!%p2910_p12)
}
  0x3c   :  { %s2914_s1 = scalar_lea.vmem %s46_s15, 32768  ;;  %p2919_p0 = scmp.lt.s32.totalorder %s46_s15, %s46_s15 }
  0x3d   :  { %p2915_p13 = scmp.ne.s32.totalorder %s46_s15, %s2914_s1  ;;  %p2920_p1 = scmp.lt.s32.totalorder %s2914_s1, %s2914_s1 }
  0x3f   :  { %p2921_p2 = por %p2920_p1, %p2919_p0 }
  0x41   :  { %p2922_p3 = pnand %p2921_p2, %p2915_p13 }
  0x43   :  { %2925 = shalt.err (!%p2922_p3)
}
  0x44   :  { %51 = dma.hbm_to_vmem [thread:$0]  %s3197_s3, 32768, %s46_s15, [#allocation5], %s2981_s4, %s2981_s4, %s2982_s27  }
  0x45   :  { %s2926_s29 = scalar_lea.hbm %s3199_s5, 8192 }
  0x46   :  { %p2927_p4 = scmp.ne.s32.totalorder %s3199_s5, %s2926_s29  ;;  %p2930_p5 = scmp.lt.u32.totalorder %s2926_s29, %s3199_s5 }
  0x48   :  { %p2932_p6 = pnand %p2930_p5, %p2927_p4 }
  0x4a   :  { %2935 = shalt.err (!%p2932_p6)
}
  0x4b   :  { %s2936_s11 = scalar_lea.vmem %s68_s17, 8192  ;;  %p2941_p8 = scmp.lt.s32.totalorder %s68_s17, %s68_s17 }
  0x4c   :  { %p2937_p7 = scmp.ne.s32.totalorder %s68_s17, %s2936_s11  ;;  %p2942_p9 = scmp.lt.s32.totalorder %s2936_s11, %s2936_s11 }
  0x4e   :  { %p2943_p10 = por %p2942_p9, %p2941_p8 }
  0x50   :  { %p2944_p11 = pnand %p2943_p10, %p2937_p7 }
  0x52   :  { %2947 = shalt.err (!%p2944_p11)
}
  0x53   :  { %s2985_s3 = smov 128   ;;  %s2986_s4 = smov 8  }
  0x54   :  { %73 = dma.hbm_to_vmem [thread:$0]  %s3199_s5, 8192, %s68_s17, [#allocation8], %s2985_s3, %s2985_s3, %s2986_s4  }
  0x55   :  { %s2987_s13 = smov [#allocation10]   ;;  %s2948_s18 = scalar_lea.hbm %s3200_s6, 16 }
  0x56   :  { %s80_s14 = sshll.u32 %s2987_s13, 4  ;;  %p2949_p12 = scmp.ne.s32.totalorder %s3200_s6, %s2948_s18  ;;  %s81_s14 = int_to_ptr.vmem [resolvable:$true] %s80_s14 }
  0x57   :  { %p2952_p13 = scmp.lt.u32.totalorder %s2948_s18, %s3200_s6 }
  0x59   :  { %p2954_p0 = pnand %p2952_p13, %p2949_p12 }
  0x5b   :  { %2957 = shalt.err (!%p2954_p0)
}
  0x5c   :  { %s2958_s2 = scalar_lea.vmem %s81_s14, 16  ;;  %s2962_s5 = scalar_lea.vmem %s81_s14, 32 }
  0x5d   :  { %p2959_p1 = scmp.ne.s32.totalorder %s81_s14, %s2958_s2  ;;  %p2963_p2 = scmp.lt.s32.totalorder %s81_s14, %s81_s14 }
  0x5e   :  { %p2964_p3 = scmp.lt.s32.totalorder %s2962_s5, %s2958_s2 }
  0x60   :  { %p2965_p4 = por %p2964_p3, %p2963_p2 }
  0x62   :  { %p2966_p5 = pnand %p2965_p4, %p2959_p1 }
  0x64   :  { %2969 = shalt.err (!%p2966_p5)
}
  0x65   :  { %83 = dma.hbm_to_vmem [thread:$0]  %s3200_s6, 16, %s81_s14, [#allocation11]  }
  0x66   :  { %2970 = dma.done.wait [#allocation3], 50176  }
  0x67   :  { %2971 = vsyncadd [#allocation3], 4294917120 }
  0x68   :  { %2972 = dma.done.wait [#allocation5], 32832  }
  0x69   :  { %2973 = vsyncadd [#allocation5], 4294934464 }
  0x6a   :  { %2974 = dma.done.wait [#allocation8], 8256  }
  0x6b   :  { %2975 = vsyncadd [#allocation8], 4294959040 }
  0x6c   :  { %2976 = dma.done.wait [#allocation11], 16  }
  0x6d   :  { %2977 = vsyncadd [#allocation11], 4294967280  ;;  %v117_v0 = vld [vmem:[#allocation2 + $0x8] sm:$0xff]  ;;  %v119_v2 = vld [vmem:[#allocation2 + $0x18] sm:$0xff]  ;;  %vm530_vm0 = vcmask 130048  }
  0x6e   :  { %v121_v1 = vld [vmem:[#allocation2 + $0x28] sm:$0xff]  ;;  %v123_v4 = vld [vmem:[#allocation2 + $0x38] sm:$0xff]  ;;  %v116_v5 = vld [vmem:[#allocation2] sm:$0xff] }
  0x6f   :  { %v2067_v3 = vpack.c.bf16 %v121_v1, %v117_v0  ;;  %v120_v6 = vld [vmem:[#allocation2 + $0x20] sm:$0xff]  ;;  %v2263_v7 = vpack.c.bf16 %v123_v4, %v119_v2  ;;  %v118_v9 = vld [vmem:[#allocation2 + $0x10] sm:$0xff]  ;;  %v125_v11 = vld [vmem:[#allocation2 + $0x48] sm:$0xff] }
  0x70   :  { %v2069_v8 = vpack.c.bf16 %v120_v6, %v116_v5  ;;  %v122_v10 = vld [vmem:[#allocation2 + $0x30] sm:$0xff]  ;;  %v129_v13 = vld [vmem:[#allocation2 + $0x68] sm:$0xff]  ;;  %v127_v14 = vld [vmem:[#allocation2 + $0x58] sm:$0xff] }
  0x71   :  { %2068 = vmatprep.subr.bf16.mxu0 %v2067_v3  ;;  %v2265_v12 = vpack.c.bf16 %v122_v10, %v118_v9  ;;  %v131_v15 = vld [vmem:[#allocation2 + $0x78] sm:$0xff]  ;;  %2264 = vmatprep.subr.bf16.mxu1 %v2263_v7  ;;  %v2071_v16 = vpack.c.bf16 %v129_v13, %v125_v11  ;;  %v124_v18 = vld [vmem:[#allocation2 + $0x40] sm:$0xff]  ;;  %v126_v20 = vld [vmem:[#allocation2 + $0x50] sm:$0xff] }
  0x72   :  { %2070 = vmatpush1.bf16.msra.mxu0 %v2069_v8  ;;  %v2267_v17 = vpack.c.bf16 %v131_v15, %v127_v14  ;;  %v128_v19 = vld [vmem:[#allocation2 + $0x60] sm:$0xff]  ;;  %v130_v22 = vld [vmem:[#allocation2 + $0x70] sm:$0xff]  ;;  %v133_v23 = vld [vmem:[#allocation2 + $0x88] sm:$0xff] }
  0x73   :  { %2266 = vmatpush1.bf16.msra.mxu1 %v2265_v12  ;;  %v2073_v21 = vpack.c.bf16 %v128_v19, %v124_v18  ;;  %v137_v24 = vld [vmem:[#allocation2 + $0xa8] sm:$0xff]  ;;  %2072 = vmatprep.subr.bf16.mxu0 %v2071_v16  ;;  %v2269_v25 = vpack.c.bf16 %v130_v22, %v126_v20  ;;  %v135_v27 = vld [vmem:[#allocation2 + $0x98] sm:$0xff]  ;;  %v132_v29 = vld [vmem:[#allocation2 + $0x80] sm:$0xff] }
  0x74   :  { %2268 = vmatprep.subr.bf16.mxu1 %v2267_v17  ;;  %v2075_v26 = vpack.c.bf16 %v137_v24, %v133_v23  ;;  %v139_v28 = vld [vmem:[#allocation2 + $0xb8] sm:$0xff]  ;;  %v136_v31 = vld [vmem:[#allocation2 + $0xa0] sm:$0xff]  ;;  %v134_v32 = vld [vmem:[#allocation2 + $0x90] sm:$0xff] }
  0x75   :  { %v2271_v30 = vpack.c.bf16 %v139_v28, %v135_v27  ;;  %v138_v33 = vld [vmem:[#allocation2 + $0xb0] sm:$0xff]  ;;  %v2077_v34 = vpack.c.bf16 %v136_v31, %v132_v29  ;;  %v141_v35 = vld [vmem:[#allocation2 + $0xc8] sm:$0xff]  ;;  %v143_v37 = vld [vmem:[#allocation2 + $0xd8] sm:$0xff] }
  0x76   :  { %2074 = vmatpush1.bf16.msra.mxu0 %v2073_v21  ;;  %v145_v36 = vld [vmem:[#allocation2 + $0xe8] sm:$0xff]  ;;  %v2273_v38 = vpack.c.bf16 %v138_v33, %v134_v32  ;;  %v147_v40 = vld [vmem:[#allocation2 + $0xf8] sm:$0xff]  ;;  %v140_v41 = vld [vmem:[#allocation2 + $0xc0] sm:$0xff] }
  0x77   :  { %2270 = vmatpush1.bf16.msra.mxu1 %v2269_v25  ;;  %2076 = vmatprep.subr.bf16.mxu0 %v2075_v26  ;;  %v2079_v39 = vpack.c.bf16 %v145_v36, %v141_v35  ;;  %v144_v42 = vld [vmem:[#allocation2 + $0xe0] sm:$0xff]  ;;  %v2275_v43 = vpack.c.bf16 %v147_v40, %v143_v37  ;;  %v142_v44 = vld [vmem:[#allocation2 + $0xd0] sm:$0xff]  ;;  %v149_v46 = vld [vmem:[#allocation2 + $0x108] sm:$0xff] }
  0x78   :  { %2272 = vmatprep.subr.bf16.mxu1 %v2271_v30  ;;  %v146_v45 = vld [vmem:[#allocation2 + $0xf0] sm:$0xff]  ;;  %v153_v47 = vld [vmem:[#allocation2 + $0x128] sm:$0xff]  ;;  %v151_v48 = vld [vmem:[#allocation2 + $0x118] sm:$0xff]  ;;  %v2081_v50 = vpack.c.bf16 %v144_v42, %v140_v41 }
  0x79   :  { %v155_v49 = vld [vmem:[#allocation2 + $0x138] sm:$0xff]  ;;  %v2277_v51 = vpack.c.bf16 %v146_v45, %v142_v44  ;;  %v2083_v52 = vpack.c.bf16 %v153_v47, %v149_v46  ;;  %v148_v53 = vld [vmem:[#allocation2 + $0x100] sm:$0xff]  ;;  %v150_v55 = vld [vmem:[#allocation2 + $0x110] sm:$0xff] }
  0x7a   :  { %2078 = vmatpush1.bf16.msra.mxu0 %v2077_v34  ;;  %v152_v54 = vld [vmem:[#allocation2 + $0x120] sm:$0xff]  ;;  %v2279_v56 = vpack.c.bf16 %v155_v49, %v151_v48  ;;  %v154_v57 = vld [vmem:[#allocation2 + $0x130] sm:$0xff]  ;;  %v157_v58 = vld [vmem:[#allocation2 + $0x148] sm:$0xff] }
  0x7b   :  { %2274 = vmatpush1.bf16.msra.mxu1 %v2273_v38  ;;  %2080 = vmatprep.subr.bf16.mxu0 %v2079_v39  ;;  %v161_v59 = vld [vmem:[#allocation2 + $0x168] sm:$0xff]  ;;  %v159_v60 = vld [vmem:[#allocation2 + $0x158] sm:$0xff]  ;;  %v2085_v62 = vpack.c.bf16 %v152_v54, %v148_v53  ;;  %v2281_v63 = vpack.c.bf16 %v154_v57, %v150_v55  ;;  %v156_v1 = vld [vmem:[#allocation2 + $0x140] sm:$0xff] }
  0x7c   :  { %2276 = vmatprep.subr.bf16.mxu1 %v2275_v43  ;;  %v163_v61 = vld [vmem:[#allocation2 + $0x178] sm:$0xff]  ;;  %v2087_v0 = vpack.c.bf16 %v161_v59, %v157_v58  ;;  %v160_v2 = vld [vmem:[#allocation2 + $0x160] sm:$0xff]  ;;  %v158_v3 = vld [vmem:[#allocation2 + $0x150] sm:$0xff] }
  0x7d   :  { %v2283_v4 = vpack.c.bf16 %v163_v61, %v159_v60  ;;  %v162_v5 = vld [vmem:[#allocation2 + $0x170] sm:$0xff]  ;;  %v165_v6 = vld [vmem:[#allocation2 + $0x188] sm:$0xff]  ;;  %v167_v8 = vld [vmem:[#allocation2 + $0x198] sm:$0xff]  ;;  %v2089_v10 = vpack.c.bf16 %v160_v2, %v156_v1 }
  0x7e   :  { %2082 = vmatpush1.bf16.msra.mxu0 %v2081_v50  ;;  %v169_v7 = vld [vmem:[#allocation2 + $0x1a8] sm:$0xff]  ;;  %v171_v9 = vld [vmem:[#allocation2 + $0x1b8] sm:$0xff]  ;;  %v2285_v11 = vpack.c.bf16 %v162_v5, %v158_v3  ;;  %v164_v13 = vld [vmem:[#allocation2 + $0x180] sm:$0xff] }
  0x7f   :  { %2278 = vmatpush1.bf16.msra.mxu1 %v2277_v51  ;;  %2084 = vmatprep.subr.bf16.mxu0 %v2083_v52  ;;  %v2091_v12 = vpack.c.bf16 %v169_v7, %v165_v6  ;;  %v168_v14 = vld [vmem:[#allocation2 + $0x1a0] sm:$0xff]  ;;  %v166_v15 = vld [vmem:[#allocation2 + $0x190] sm:$0xff]  ;;  %v2287_v16 = vpack.c.bf16 %v171_v9, %v167_v8  ;;  %v173_v18 = vld [vmem:[#allocation2 + $0x1c8] sm:$0xff] }
  0x80   :  { %2280 = vmatprep.subr.bf16.mxu1 %v2279_v56  ;;  %v170_v17 = vld [vmem:[#allocation2 + $0x1b0] sm:$0xff]  ;;  %v177_v19 = vld [vmem:[#allocation2 + $0x1e8] sm:$0xff]  ;;  %v175_v20 = vld [vmem:[#allocation2 + $0x1d8] sm:$0xff]  ;;  %v2093_v22 = vpack.c.bf16 %v168_v14, %v164_v13 }
  0x81   :  { %v179_v21 = vld [vmem:[#allocation2 + $0x1f8] sm:$0xff]  ;;  %v2289_v23 = vpack.c.bf16 %v170_v17, %v166_v15  ;;  %v2095_v24 = vpack.c.bf16 %v177_v19, %v173_v18  ;;  %v172_v25 = vld [vmem:[#allocation2 + $0x1c0] sm:$0xff]  ;;  %v174_v27 = vld [vmem:[#allocation2 + $0x1d0] sm:$0xff] }
  0x82   :  { %2086 = vmatpush1.bf16.msra.mxu0 %v2085_v62  ;;  %v176_v26 = vld [vmem:[#allocation2 + $0x1e0] sm:$0xff]  ;;  %v2291_v28 = vpack.c.bf16 %v179_v21, %v175_v20  ;;  %v178_v29 = vld [vmem:[#allocation2 + $0x1f0] sm:$0xff]  ;;  %v181_v30 = vld [vmem:[#allocation2 + $0x208] sm:$0xff] }
  0x83   :  { %2282 = vmatpush1.bf16.msra.mxu1 %v2281_v63  ;;  %2088 = vmatprep.subr.bf16.mxu0 %v2087_v0  ;;  %v185_v31 = vld [vmem:[#allocation2 + $0x228] sm:$0xff]  ;;  %v183_v32 = vld [vmem:[#allocation2 + $0x218] sm:$0xff]  ;;  %v2097_v34 = vpack.c.bf16 %v176_v26, %v172_v25  ;;  %v2293_v35 = vpack.c.bf16 %v178_v29, %v174_v27  ;;  %v180_v37 = vld [vmem:[#allocation2 + $0x200] sm:$0xff] }
  0x84   :  { %2284 = vmatprep.subr.bf16.mxu1 %v2283_v4  ;;  %v187_v33 = vld [vmem:[#allocation2 + $0x238] sm:$0xff]  ;;  %v2099_v36 = vpack.c.bf16 %v185_v31, %v181_v30  ;;  %v184_v38 = vld [vmem:[#allocation2 + $0x220] sm:$0xff]  ;;  %v182_v39 = vld [vmem:[#allocation2 + $0x210] sm:$0xff] }
  0x85   :  { %v2295_v40 = vpack.c.bf16 %v187_v33, %v183_v32  ;;  %v186_v41 = vld [vmem:[#allocation2 + $0x230] sm:$0xff]  ;;  %v189_v42 = vld [vmem:[#allocation2 + $0x248] sm:$0xff]  ;;  %v191_v44 = vld [vmem:[#allocation2 + $0x258] sm:$0xff]  ;;  %v2101_v46 = vpack.c.bf16 %v184_v38, %v180_v37 }
  0x86   :  { %2090 = vmatpush1.bf16.msra.mxu0 %v2089_v10  ;;  %v193_v43 = vld [vmem:[#allocation2 + $0x268] sm:$0xff]  ;;  %v195_v45 = vld [vmem:[#allocation2 + $0x278] sm:$0xff]  ;;  %v2297_v47 = vpack.c.bf16 %v186_v41, %v182_v39  ;;  %v188_v49 = vld [vmem:[#allocation2 + $0x240] sm:$0xff] }
  0x87   :  { %2286 = vmatpush1.bf16.msra.mxu1 %v2285_v11  ;;  %2092 = vmatprep.subr.bf16.mxu0 %v2091_v12  ;;  %v2103_v48 = vpack.c.bf16 %v193_v43, %v189_v42  ;;  %v192_v50 = vld [vmem:[#allocation2 + $0x260] sm:$0xff]  ;;  %v190_v51 = vld [vmem:[#allocation2 + $0x250] sm:$0xff]  ;;  %v2299_v52 = vpack.c.bf16 %v195_v45, %v191_v44  ;;  %v197_v54 = vld [vmem:[#allocation2 + $0x288] sm:$0xff] }
  0x88   :  { %2288 = vmatprep.subr.bf16.mxu1 %v2287_v16  ;;  %v194_v53 = vld [vmem:[#allocation2 + $0x270] sm:$0xff]  ;;  %v201_v55 = vld [vmem:[#allocation2 + $0x2a8] sm:$0xff]  ;;  %v199_v56 = vld [vmem:[#allocation2 + $0x298] sm:$0xff]  ;;  %v2105_v58 = vpack.c.bf16 %v192_v50, %v188_v49 }
  0x89   :  { %v203_v57 = vld [vmem:[#allocation2 + $0x2b8] sm:$0xff]  ;;  %v2301_v59 = vpack.c.bf16 %v194_v53, %v190_v51  ;;  %v2107_v60 = vpack.c.bf16 %v201_v55, %v197_v54  ;;  %v196_v61 = vld [vmem:[#allocation2 + $0x280] sm:$0xff]  ;;  %v198_v63 = vld [vmem:[#allocation2 + $0x290] sm:$0xff] }
  0x8a   :  { %2094 = vmatpush1.bf16.msra.mxu0 %v2093_v22  ;;  %v200_v62 = vld [vmem:[#allocation2 + $0x2a0] sm:$0xff]  ;;  %v2303_v0 = vpack.c.bf16 %v203_v57, %v199_v56  ;;  %v202_v1 = vld [vmem:[#allocation2 + $0x2b0] sm:$0xff]  ;;  %v205_v2 = vld [vmem:[#allocation2 + $0x2c8] sm:$0xff] }
  0x8b   :  { %2290 = vmatpush1.bf16.msra.mxu1 %v2289_v23  ;;  %2096 = vmatprep.subr.bf16.mxu0 %v2095_v24  ;;  %v209_v3 = vld [vmem:[#allocation2 + $0x2e8] sm:$0xff]  ;;  %v207_v4 = vld [vmem:[#allocation2 + $0x2d8] sm:$0xff]  ;;  %v2109_v6 = vpack.c.bf16 %v200_v62, %v196_v61  ;;  %v204_v7 = vld [vmem:[#allocation2 + $0x2c0] sm:$0xff]  ;;  %v2305_v8 = vpack.c.bf16 %v202_v1, %v198_v63 }
  0x8c   :  { %2292 = vmatprep.subr.bf16.mxu1 %v2291_v28  ;;  %v211_v5 = vld [vmem:[#allocation2 + $0x2f8] sm:$0xff]  ;;  %v2111_v9 = vpack.c.bf16 %v209_v3, %v205_v2  ;;  %v208_v10 = vld [vmem:[#allocation2 + $0x2e0] sm:$0xff]  ;;  %v206_v11 = vld [vmem:[#allocation2 + $0x2d0] sm:$0xff] }
  0x8d   :  { %v210_v12 = vld [vmem:[#allocation2 + $0x2f0] sm:$0xff]  ;;  %v2307_v13 = vpack.c.bf16 %v211_v5, %v207_v4  ;;  %v213_v14 = vld [vmem:[#allocation2 + $0x308] sm:$0xff]  ;;  %v215_v17 = vld [vmem:[#allocation2 + $0x318] sm:$0xff]  ;;  %v2113_v19 = vpack.c.bf16 %v208_v10, %v204_v7 }
  0x8e   :  { %2098 = vmatpush1.bf16.msra.mxu0 %v2097_v34  ;;  %v217_v15 = vld [vmem:[#allocation2 + $0x328] sm:$0xff]  ;;  %v219_v18 = vld [vmem:[#allocation2 + $0x338] sm:$0xff]  ;;  %v2309_v20 = vpack.c.bf16 %v210_v12, %v206_v11  ;;  %v212_v22 = vld [vmem:[#allocation2 + $0x300] sm:$0xff] }
  0x8f   :  { %2294 = vmatpush1.bf16.msra.mxu1 %v2293_v35  ;;  %2100 = vmatprep.subr.bf16.mxu0 %v2099_v36  ;;  %v103_v16 = vld [vmem:[%s3194_s0 + $0x8] sm:$0xff]  ;;  %v2115_v21 = vpack.c.bf16 %v217_v15, %v213_v14  ;;  %v216_v23 = vld [vmem:[#allocation2 + $0x320] sm:$0xff]  ;;  %v214_v24 = vld [vmem:[#allocation2 + $0x310] sm:$0xff]  ;;  %v2311_v25 = vpack.c.bf16 %v219_v18, %v215_v17 }
  0x90   :  { %2296 = vmatprep.subr.bf16.mxu1 %v2295_v40  ;;  %601 = vmatprep.mubr.f32.mxu0 %v103_v16  ;;  %v218_v26 = vld [vmem:[#allocation2 + $0x330] sm:$0xff]  ;;  %v221_v27 = vld [vmem:[#allocation2 + $0x348] sm:$0xff]  ;;  %v223_v29 = vld [vmem:[#allocation2 + $0x358] sm:$0xff]  ;;  %v2117_v31 = vpack.c.bf16 %v216_v23, %v212_v22 }
  0x91   :  { %909 = vmatprep.mubr.f32.mxu1 %v103_v16  ;;  %v225_v28 = vld [vmem:[#allocation2 + $0x368] sm:$0xff]  ;;  %v227_v30 = vld [vmem:[#allocation2 + $0x378] sm:$0xff]  ;;  %v2313_v32 = vpack.c.bf16 %v218_v26, %v214_v24  ;;  %v220_v34 = vld [vmem:[#allocation2 + $0x340] sm:$0xff] }
  0x92   :  { %2102 = vmatpush1.bf16.msra.mxu0 %v2101_v46  ;;  %v2119_v33 = vpack.c.bf16 %v225_v28, %v221_v27  ;;  %v224_v35 = vld [vmem:[#allocation2 + $0x360] sm:$0xff]  ;;  %v222_v36 = vld [vmem:[#allocation2 + $0x350] sm:$0xff]  ;;  %v2315_v37 = vpack.c.bf16 %v227_v30, %v223_v29  ;;  %v229_v39 = vld [vmem:[#allocation2 + $0x388] sm:$0xff] }
  0x93   :  { %2298 = vmatpush1.bf16.msra.mxu1 %v2297_v47  ;;  %2104 = vmatprep.subr.bf16.mxu0 %v2103_v48  ;;  %v226_v38 = vld [vmem:[#allocation2 + $0x370] sm:$0xff]  ;;  %v233_v40 = vld [vmem:[#allocation2 + $0x3a8] sm:$0xff]  ;;  %v231_v41 = vld [vmem:[#allocation2 + $0x398] sm:$0xff]  ;;  %v2121_v43 = vpack.c.bf16 %v224_v35, %v220_v34 }
  0x94   :  { %2300 = vmatprep.subr.bf16.mxu1 %v2299_v52  ;;  %v235_v42 = vld [vmem:[#allocation2 + $0x3b8] sm:$0xff]  ;;  %v2317_v44 = vpack.c.bf16 %v226_v38, %v222_v36  ;;  %v2123_v45 = vpack.c.bf16 %v233_v40, %v229_v39  ;;  %v228_v46 = vld [vmem:[#allocation2 + $0x380] sm:$0xff]  ;;  %v230_v48 = vld [vmem:[#allocation2 + $0x390] sm:$0xff] }
  0x95   :  { %v232_v47 = vld [vmem:[#allocation2 + $0x3a0] sm:$0xff]  ;;  %v2319_v49 = vpack.c.bf16 %v235_v42, %v231_v41  ;;  %v234_v50 = vld [vmem:[#allocation2 + $0x3b0] sm:$0xff]  ;;  %v237_v51 = vld [vmem:[#allocation2 + $0x3c8] sm:$0xff] }
  0x96   :  { %2106 = vmatpush1.bf16.msra.mxu0 %v2105_v58  ;;  %v241_v52 = vld [vmem:[#allocation2 + $0x3e8] sm:$0xff]  ;;  %v239_v53 = vld [vmem:[#allocation2 + $0x3d8] sm:$0xff]  ;;  %v2125_v55 = vpack.c.bf16 %v232_v47, %v228_v46  ;;  %v2321_v56 = vpack.c.bf16 %v234_v50, %v230_v48  ;;  %v236_v58 = vld [vmem:[#allocation2 + $0x3c0] sm:$0xff] }
  0x97   :  { %2302 = vmatpush1.bf16.msra.mxu1 %v2301_v59  ;;  %2108 = vmatprep.subr.bf16.mxu0 %v2107_v60  ;;  %v243_v54 = vld [vmem:[#allocation2 + $0x3f8] sm:$0xff]  ;;  %v2127_v57 = vpack.c.bf16 %v241_v52, %v237_v51  ;;  %v240_v59 = vld [vmem:[#allocation2 + $0x3e0] sm:$0xff]  ;;  %v238_v60 = vld [vmem:[#allocation2 + $0x3d0] sm:$0xff] }
  0x98   :  { %2304 = vmatprep.subr.bf16.mxu1 %v2303_v0  ;;  %v2323_v61 = vpack.c.bf16 %v243_v54, %v239_v53  ;;  %v242_v62 = vld [vmem:[#allocation2 + $0x3f0] sm:$0xff]  ;;  %v245_v63 = vld [vmem:[#allocation2 + $0x408] sm:$0xff]  ;;  %v247_v1 = vld [vmem:[#allocation2 + $0x418] sm:$0xff]  ;;  %v2129_v3 = vpack.c.bf16 %v240_v59, %v236_v58 }
  0x99   :  { %v249_v0 = vld [vmem:[#allocation2 + $0x428] sm:$0xff]  ;;  %v251_v2 = vld [vmem:[#allocation2 + $0x438] sm:$0xff]  ;;  %v2325_v4 = vpack.c.bf16 %v242_v62, %v238_v60  ;;  %v248_v7 = vld [vmem:[#allocation2 + $0x420] sm:$0xff] }
  0x9a   :  { %2110 = vmatpush1.bf16.msra.mxu0 %v2109_v6  ;;  %v2131_v5 = vpack.c.bf16 %v249_v0, %v245_v63  ;;  %v244_v6 = vld [vmem:[#allocation2 + $0x400] sm:$0xff]  ;;  %v250_v10 = vld [vmem:[#allocation2 + $0x430] sm:$0xff]  ;;  %v253_v11 = vld [vmem:[#allocation2 + $0x448] sm:$0xff] }
  0x9b   :  { %2306 = vmatpush1.bf16.msra.mxu1 %v2305_v8  ;;  %2112 = vmatprep.subr.bf16.mxu0 %v2111_v9  ;;  %v246_v8 = vld [vmem:[#allocation2 + $0x410] sm:$0xff]  ;;  %v2327_v9 = vpack.c.bf16 %v251_v2, %v247_v1  ;;  %v257_v12 = vld [vmem:[#allocation2 + $0x468] sm:$0xff]  ;;  %v259_v14 = vld [vmem:[#allocation2 + $0x478] sm:$0xff]  ;;  %v2133_v16 = vpack.c.bf16 %v248_v7, %v244_v6 }
  0x9c   :  { %2308 = vmatprep.subr.bf16.mxu1 %v2307_v13  ;;  %v255_v13 = vld [vmem:[#allocation2 + $0x458] sm:$0xff]  ;;  %v102_v15 = vld [vmem:[%s3194_s0] sm:$0xff]  ;;  %v2329_v17 = vpack.c.bf16 %v250_v10, %v246_v8  ;;  %v2135_v18 = vpack.c.bf16 %v257_v12, %v253_v11  ;;  %v258_v23 = vld [vmem:[#allocation2 + $0x470] sm:$0xff] }
  0x9d   :  { %v2331_v22 = vpack.c.bf16 %v259_v14, %v255_v13  ;;  %v261_v24 = vld [vmem:[#allocation2 + $0x488] sm:$0xff]  ;;  %v263_v26 = vld [vmem:[#allocation2 + $0x498] sm:$0xff]  ;;  %v266_v35 = vld [vmem:[#allocation2 + $0x4b0] sm:$0xff] }
  0x9e   :  { %2114 = vmatpush1.bf16.msra.mxu0 %v2113_v19  ;;  %v252_v19 = vld [vmem:[#allocation2 + $0x440] sm:$0xff]  ;;  %v267_v27 = vld [vmem:[#allocation2 + $0x4b8] sm:$0xff]  ;;  %v269_v36 = vld [vmem:[#allocation2 + $0x4c8] sm:$0xff] }
  0x9f   :  { %2310 = vmatpush1.bf16.msra.mxu1 %v2309_v20  ;;  %2116 = vmatprep.subr.bf16.mxu0 %v2115_v21  ;;  %v256_v20 = vld [vmem:[#allocation2 + $0x460] sm:$0xff]  ;;  %v254_v21 = vld [vmem:[#allocation2 + $0x450] sm:$0xff]  ;;  %v2335_v34 = vpack.c.bf16 %v267_v27, %v263_v26  ;;  %v271_v38 = vld [vmem:[#allocation2 + $0x4d8] sm:$0xff] }
  0xa0   :  { %2312 = vmatprep.subr.bf16.mxu1 %v2311_v25  ;;  %v265_v25 = vld [vmem:[#allocation2 + $0x4a8] sm:$0xff]  ;;  %v2137_v28 = vpack.c.bf16 %v256_v20, %v252_v19  ;;  %v2333_v29 = vpack.c.bf16 %v258_v23, %v254_v21  ;;  %v275_v39 = vld [vmem:[#allocation2 + $0x4f8] sm:$0xff]  ;;  %v274_v47 = vld [vmem:[#allocation2 + $0x4f0] sm:$0xff] }
  0xa1   :  { %v2139_v30 = vpack.c.bf16 %v265_v25, %v261_v24  ;;  %v2339_v46 = vpack.c.bf16 %v275_v39, %v271_v38  ;;  %v277_v48 = vld [vmem:[#allocation2 + $0x508] sm:$0xff]  ;;  %v279_v50 = vld [vmem:[#allocation2 + $0x518] sm:$0xff]  ;;  %v282_v59 = vld [vmem:[#allocation2 + $0x530] sm:$0xff] }
  0xa2   :  { %2118 = vmatpush1.bf16.msra.mxu0 %v2117_v31  ;;  %v260_v31 = vld [vmem:[#allocation2 + $0x480] sm:$0xff]  ;;  %v283_v51 = vld [vmem:[#allocation2 + $0x538] sm:$0xff]  ;;  %v285_v60 = vld [vmem:[#allocation2 + $0x548] sm:$0xff] }
  0xa3   :  { %2314 = vmatpush1.bf16.msra.mxu1 %v2313_v32  ;;  %2120 = vmatprep.subr.bf16.mxu0 %v2119_v33  ;;  %v264_v32 = vld [vmem:[#allocation2 + $0x4a0] sm:$0xff]  ;;  %v262_v33 = vld [vmem:[#allocation2 + $0x490] sm:$0xff]  ;;  %v2343_v58 = vpack.c.bf16 %v283_v51, %v279_v50  ;;  %v287_v62 = vld [vmem:[#allocation2 + $0x558] sm:$0xff] }
  0xa4   :  { %2316 = vmatprep.subr.bf16.mxu1 %v2315_v37  ;;  %v273_v37 = vld [vmem:[#allocation2 + $0x4e8] sm:$0xff]  ;;  %v2141_v40 = vpack.c.bf16 %v264_v32, %v260_v31  ;;  %v2337_v41 = vpack.c.bf16 %v266_v35, %v262_v33  ;;  %v291_v63 = vld [vmem:[#allocation2 + $0x578] sm:$0xff]  ;;  %v290_v7 = vld [vmem:[#allocation2 + $0x570] sm:$0xff] }
  0xa5   :  { %v2143_v42 = vpack.c.bf16 %v273_v37, %v269_v36  ;;  %v2347_v6 = vpack.c.bf16 %v291_v63, %v287_v62  ;;  %v293_v8 = vld [vmem:[#allocation2 + $0x588] sm:$0xff]  ;;  %v295_v10 = vld [vmem:[#allocation2 + $0x598] sm:$0xff]  ;;  %v110_v12 = vld [vmem:[%s3194_s0 + $0x40] sm:$0xff] }
  0xa6   :  { %2122 = vmatpush1.bf16.msra.mxu0 %v2121_v43  ;;  %v268_v43 = vld [vmem:[#allocation2 + $0x4c0] sm:$0xff]  ;;  %v299_v11 = vld [vmem:[#allocation2 + $0x5b8] sm:$0xff]  ;;  %v298_v19 = vld [vmem:[#allocation2 + $0x5b0] sm:$0xff] }
  0xa7   :  { %2318 = vmatpush1.bf16.msra.mxu1 %v2317_v44  ;;  %2124 = vmatprep.subr.bf16.mxu0 %v2123_v45  ;;  %v272_v44 = vld [vmem:[#allocation2 + $0x4e0] sm:$0xff]  ;;  %v270_v45 = vld [vmem:[#allocation2 + $0x4d0] sm:$0xff]  ;;  %v109_v20 = vld [vmem:[%s3194_s0 + $0x38] sm:$0xff]  ;;  %v2351_v21 = vpack.c.bf16 %v299_v11, %v295_v10 }
  0xa8   :  { %2320 = vmatprep.subr.bf16.mxu1 %v2319_v49  ;;  %v281_v49 = vld [vmem:[#allocation2 + $0x528] sm:$0xff]  ;;  %v2145_v52 = vpack.c.bf16 %v272_v44, %v268_v43  ;;  %v2341_v53 = vpack.c.bf16 %v274_v47, %v270_v45  ;;  %v292_v14 = vld [vmem:[#allocation2 + $0x580] sm:$0xff]  ;;  %v105_v24 = vld [vmem:[%s3194_s0 + $0x18] sm:$0xff] }
  0xa9   :  { %v2147_v54 = vpack.c.bf16 %v281_v49, %v277_v48  ;;  %v305_v23 = vld [vmem:[#allocation2 + $0x5e8] sm:$0xff]  ;;  %v303_v25 = vld [vmem:[#allocation2 + $0x5d8] sm:$0xff]  ;;  %v304_v31 = vld [vmem:[#allocation2 + $0x5e0] sm:$0xff] }
  0xaa   :  { %2126 = vmatpush1.bf16.msra.mxu0 %v2125_v55  ;;  %v276_v55 = vld [vmem:[#allocation2 + $0x500] sm:$0xff]  ;;  %v307_v26 = vld [vmem:[#allocation2 + $0x5f8] sm:$0xff]  ;;  %v302_v32 = vld [vmem:[#allocation2 + $0x5d0] sm:$0xff] }
  0xab   :  { %2322 = vmatpush1.bf16.msra.mxu1 %v2321_v56  ;;  %2128 = vmatprep.subr.bf16.mxu0 %v2127_v57  ;;  %v280_v56 = vld [vmem:[#allocation2 + $0x520] sm:$0xff]  ;;  %v278_v57 = vld [vmem:[#allocation2 + $0x510] sm:$0xff]  ;;  %v2355_v33 = vpack.c.bf16 %v307_v26, %v303_v25  ;;  %v309_v35 = vld [vmem:[#allocation2 + $0x608] sm:$0xff] }
  0xac   :  { %2324 = vmatprep.subr.bf16.mxu1 %v2323_v61  ;;  %v289_v61 = vld [vmem:[#allocation2 + $0x568] sm:$0xff]  ;;  %v2149_v0 = vpack.c.bf16 %v280_v56, %v276_v55  ;;  %v2345_v1 = vpack.c.bf16 %v282_v59, %v278_v57  ;;  %v311_v37 = vld [vmem:[#allocation2 + $0x618] sm:$0xff]  ;;  %v312_v43 = vld [vmem:[#allocation2 + $0x620] sm:$0xff] }
  0xad   :  { %v2151_v2 = vpack.c.bf16 %v289_v61, %v285_v60  ;;  %v313_v36 = vld [vmem:[#allocation2 + $0x628] sm:$0xff]  ;;  %v315_v38 = vld [vmem:[#allocation2 + $0x638] sm:$0xff]  ;;  %v310_v44 = vld [vmem:[#allocation2 + $0x610] sm:$0xff] }
  0xae   :  { %2130 = vmatpush1.bf16.msra.mxu0 %v2129_v3  ;;  %v284_v3 = vld [vmem:[#allocation2 + $0x540] sm:$0xff]  ;;  %v2359_v45 = vpack.c.bf16 %v315_v38, %v311_v37  ;;  %v317_v47 = vld [vmem:[#allocation2 + $0x648] sm:$0xff]  ;;  %v319_v49 = vld [vmem:[#allocation2 + $0x658] sm:$0xff] }
  0xaf   :  { %2326 = vmatpush1.bf16.msra.mxu1 %v2325_v4  ;;  %2132 = vmatprep.subr.bf16.mxu0 %v2131_v5  ;;  %v288_v4 = vld [vmem:[#allocation2 + $0x560] sm:$0xff]  ;;  %v286_v5 = vld [vmem:[#allocation2 + $0x550] sm:$0xff]  ;;  %v321_v48 = vld [vmem:[#allocation2 + $0x668] sm:$0xff] }
  0xb0   :  { %2328 = vmatprep.subr.bf16.mxu1 %v2327_v9  ;;  %v297_v9 = vld [vmem:[#allocation2 + $0x5a8] sm:$0xff]  ;;  %v2153_v13 = vpack.c.bf16 %v288_v4, %v284_v3  ;;  %v323_v50 = vld [vmem:[#allocation2 + $0x678] sm:$0xff]  ;;  %v320_v55 = vld [vmem:[#allocation2 + $0x660] sm:$0xff] }
  0xb1   :  { %602 = vmatmul.mubr.f32.vlgmr.msra.gmra.mrb[0].mxu0 %v102_v15  ;;  %v318_v56 = vld [vmem:[#allocation2 + $0x650] sm:$0xff]  ;;  %v2363_v57 = vpack.c.bf16 %v323_v50, %v319_v49  ;;  %v325_v59 = vld [vmem:[#allocation2 + $0x688] sm:$0xff]  ;;  %v327_v61 = vld [vmem:[#allocation2 + $0x698] sm:$0xff] }
  0xb2   :  { %2134 = vmatpush1.bf16.msra.mxu0 %v2133_v16  ;;  %910 = vmatmul.mubr.f32.vlgmr.msra.gmra.mrb[0].mxu1 %v102_v15  ;;  %v296_v15 = vld [vmem:[#allocation2 + $0x5a0] sm:$0xff]  ;;  %v2349_v16 = vpack.c.bf16 %v290_v7, %v286_v5  ;;  %v329_v60 = vld [vmem:[#allocation2 + $0x6a8] sm:$0xff]  ;;  %v331_v62 = vld [vmem:[#allocation2 + $0x6b8] sm:$0xff] }
  0xb3   :  { %2330 = vmatpush1.bf16.msra.mxu1 %v2329_v17  ;;  %2136 = vmatprep.subr.bf16.mxu0 %v2135_v18  ;;  %v2155_v17 = vpack.c.bf16 %v297_v9, %v293_v8  ;;  %v294_v18 = vld [vmem:[#allocation2 + $0x590] sm:$0xff]  ;;  %v2157_v27 = vpack.c.bf16 %v296_v15, %v292_v14  ;;  %v328_v3 = vld [vmem:[#allocation2 + $0x6a0] sm:$0xff]  ;;  %v2367_v5 = vpack.c.bf16 %v331_v62, %v327_v61  ;;  %v333_v7 = vld [vmem:[#allocation2 + $0x6c8] sm:$0xff] }
  0xb4   :  { %2332 = vmatprep.subr.bf16.mxu1 %v2331_v22  ;;  %607 = vmatprep.mubr.f32.mxu0 %v110_v12  ;;  %v301_v22 = vld [vmem:[#allocation2 + $0x5c8] sm:$0xff]  ;;  %v326_v4 = vld [vmem:[#allocation2 + $0x690] sm:$0xff]  ;;  %v335_v9 = vld [vmem:[#allocation2 + $0x6d8] sm:$0xff] }
  0xb5   :  { %915 = vmatprep.mubr.f32.mxu1 %v110_v12  ;;  %608 = vmatmul.mubr.f32.gmra.mrb[2].mxu0 %v109_v20  ;;  %v337_v8 = vld [vmem:[#allocation2 + $0x6e8] sm:$0xff]  ;;  %v339_v10 = vld [vmem:[#allocation2 + $0x6f8] sm:$0xff]  ;;  %v332_v14 = vld [vmem:[#allocation2 + $0x6c0] sm:$0xff] }
  0xb6   :  { %2138 = vmatpush1.bf16.msra.mxu0 %v2137_v28  ;;  %916 = vmatmul.mubr.f32.gmra.mrb[2].mxu1 %v109_v20  ;;  %v2353_v28 = vpack.c.bf16 %v298_v19, %v294_v18  ;;  %v336_v15 = vld [vmem:[#allocation2 + $0x6e0] sm:$0xff]  ;;  %v338_v18 = vld [vmem:[#allocation2 + $0x6f0] sm:$0xff]  ;;  %v341_v19 = vld [vmem:[#allocation2 + $0x708] sm:$0xff] }
  0xb7   :  { %2334 = vmatpush1.bf16.msra.mxu1 %v2333_v29  ;;  %2140 = vmatprep.subr.bf16.mxu0 %v2139_v30  ;;  %v2159_v29 = vpack.c.bf16 %v305_v23, %v301_v22  ;;  %v300_v30 = vld [vmem:[#allocation2 + $0x5c0] sm:$0xff]  ;;  %v345_v20 = vld [vmem:[#allocation2 + $0x728] sm:$0xff]  ;;  %v347_v22 = vld [vmem:[#allocation2 + $0x738] sm:$0xff]  ;;  %v2177_v23 = vpack.c.bf16 %v336_v15, %v332_v14 }
  0xb8   :  { %2336 = vmatprep.subr.bf16.mxu1 %v2335_v34  ;;  %678 = vmatprep.mubr.f32.mxu0 %v105_v24  ;;  %v306_v34 = vld [vmem:[#allocation2 + $0x5f0] sm:$0xff]  ;;  %v2161_v39 = vpack.c.bf16 %v304_v31, %v300_v30  ;;  %v2179_v25 = vpack.c.bf16 %v345_v20, %v341_v19  ;;  %v340_v26 = vld [vmem:[#allocation2 + $0x700] sm:$0xff]  ;;  %v349_v31 = vld [vmem:[#allocation2 + $0x748] sm:$0xff] }
  0xb9   :  { %986 = vmatprep.mubr.f32.mxu1 %v105_v24  ;;  %v346_v30 = vld [vmem:[#allocation2 + $0x730] sm:$0xff]  ;;  %v348_v38 = vld [vmem:[#allocation2 + $0x740] sm:$0xff]  ;;  %v381_v15 = vld [vmem:[#allocation2 + $0x848] sm:$0xff] }
  0xba   :  { %2142 = vmatpush1.bf16.msra.mxu0 %v2141_v40  ;;  %v2357_v40 = vpack.c.bf16 %v306_v34, %v302_v32  ;;  %v353_v32 = vld [vmem:[#allocation2 + $0x768] sm:$0xff]  ;;  %v355_v34 = vld [vmem:[#allocation2 + $0x778] sm:$0xff]  ;;  %v356_v50 = vld [vmem:[#allocation2 + $0x780] sm:$0xff] }
  0xbb   :  { %2338 = vmatpush1.bf16.msra.mxu1 %v2337_v41  ;;  %2144 = vmatprep.subr.bf16.mxu0 %v2143_v42  ;;  %v2163_v41 = vpack.c.bf16 %v313_v36, %v309_v35  ;;  %v308_v42 = vld [vmem:[#allocation2 + $0x600] sm:$0xff]  ;;  %v2183_v37 = vpack.c.bf16 %v353_v32, %v349_v31  ;;  %v378_v14 = vld [vmem:[#allocation2 + $0x830] sm:$0xff]  ;;  %v395_v31 = vld [vmem:[#allocation2 + $0x8b8] sm:$0xff] }
  0xbc   :  { %2340 = vmatprep.subr.bf16.mxu1 %v2339_v46  ;;  %v314_v46 = vld [vmem:[#allocation2 + $0x630] sm:$0xff]  ;;  %v2165_v51 = vpack.c.bf16 %v312_v43, %v308_v42  ;;  %v357_v43 = vld [vmem:[#allocation2 + $0x788] sm:$0xff]  ;;  %v364_v62 = vld [vmem:[#allocation2 + $0x7c0] sm:$0xff] }
  0xbd   :  { %v354_v42 = vld [vmem:[#allocation2 + $0x770] sm:$0xff] }
  0xbe   :  { %2146 = vmatpush1.bf16.msra.mxu0 %v2145_v52  ;;  %v2361_v52 = vpack.c.bf16 %v314_v46, %v310_v44  ;;  %v361_v44 = vld [vmem:[#allocation2 + $0x7a8] sm:$0xff]  ;;  %v363_v46 = vld [vmem:[#allocation2 + $0x7b8] sm:$0xff]  ;;  %v104_v19 = vld [vmem:[%s3194_s0 + $0x10] sm:$0xff] }
  0xbf   :  { %2342 = vmatpush1.bf16.msra.mxu1 %v2341_v53  ;;  %2148 = vmatprep.subr.bf16.mxu0 %v2147_v54  ;;  %v2167_v53 = vpack.c.bf16 %v321_v48, %v317_v47  ;;  %v316_v54 = vld [vmem:[#allocation2 + $0x640] sm:$0xff]  ;;  %v2187_v49 = vpack.c.bf16 %v361_v44, %v357_v43  ;;  %v112_v32 = vld [vmem:[%s3194_s0 + $0x50] sm:$0xff]  ;;  %v401_v43 = vld [vmem:[#allocation2 + $0x8e8] sm:$0xff] }
  0xc0   :  { %2344 = vmatprep.subr.bf16.mxu1 %v2343_v58  ;;  %v322_v58 = vld [vmem:[#allocation2 + $0x670] sm:$0xff]  ;;  %v2169_v63 = vpack.c.bf16 %v320_v55, %v316_v54  ;;  %v365_v55 = vld [vmem:[#allocation2 + $0x7c8] sm:$0xff]  ;;  %v399_v44 = vld [vmem:[#allocation2 + $0x8d8] sm:$0xff] }
  0xc1   :  { %v362_v54 = vld [vmem:[#allocation2 + $0x7b0] sm:$0xff] }
  0xc2   :  { %2150 = vmatpush1.bf16.msra.mxu0 %v2149_v0  ;;  %v2365_v0 = vpack.c.bf16 %v322_v58, %v318_v56  ;;  %v369_v56 = vld [vmem:[#allocation2 + $0x7e8] sm:$0xff]  ;;  %v371_v58 = vld [vmem:[#allocation2 + $0x7f8] sm:$0xff] }
  0xc3   :  { %2346 = vmatpush1.bf16.msra.mxu1 %v2345_v1  ;;  %2152 = vmatprep.subr.bf16.mxu0 %v2151_v2  ;;  %v2171_v1 = vpack.c.bf16 %v329_v60, %v325_v59  ;;  %v324_v2 = vld [vmem:[#allocation2 + $0x680] sm:$0xff]  ;;  %v2191_v61 = vpack.c.bf16 %v369_v56, %v365_v55  ;;  %v405_v55 = vld [vmem:[#allocation2 + $0x908] sm:$0xff] }
  0xc4   :  { %2348 = vmatprep.subr.bf16.mxu1 %v2347_v6  ;;  %v330_v6 = vld [vmem:[#allocation2 + $0x6b0] sm:$0xff]  ;;  %v2173_v11 = vpack.c.bf16 %v328_v3, %v324_v2  ;;  %v373_v3 = vld [vmem:[#allocation2 + $0x808] sm:$0xff] }
  0xc5   :  { %v2369_v12 = vpack.c.bf16 %v330_v6, %v326_v4  ;;  %v370_v2 = vld [vmem:[#allocation2 + $0x7f0] sm:$0xff]  ;;  %v377_v4 = vld [vmem:[#allocation2 + $0x828] sm:$0xff]  ;;  %v379_v6 = vld [vmem:[#allocation2 + $0x838] sm:$0xff] }
  0xc6   :  { %2154 = vmatpush1.bf16.msra.mxu0 %v2153_v13  ;;  %v2175_v13 = vpack.c.bf16 %v337_v8, %v333_v7  ;;  %v409_v56 = vld [vmem:[#allocation2 + $0x928] sm:$0xff] }
  0xc7   :  { %2350 = vmatpush1.bf16.msra.mxu1 %v2349_v16  ;;  %2156 = vmatprep.subr.bf16.mxu0 %v2155_v17  ;;  %v334_v16 = vld [vmem:[#allocation2 + $0x6d0] sm:$0xff]  ;;  %v2371_v17 = vpack.c.bf16 %v339_v10, %v335_v9  ;;  %v2195_v9 = vpack.c.bf16 %v377_v4, %v373_v3  ;;  %v372_v10 = vld [vmem:[#allocation2 + $0x800] sm:$0xff]  ;;  %v413_v3 = vld [vmem:[#allocation2 + $0x948] sm:$0xff] }
  0xc8   :  { %2352 = vmatprep.subr.bf16.mxu1 %v2351_v21  ;;  %v343_v21 = vld [vmem:[#allocation2 + $0x718] sm:$0xff]  ;;  %v2373_v24 = vpack.c.bf16 %v338_v18, %v334_v16  ;;  %v385_v16 = vld [vmem:[#allocation2 + $0x868] sm:$0xff] }
  0xc9   :  { %v387_v18 = vld [vmem:[#allocation2 + $0x878] sm:$0xff]  ;;  %v417_v4 = vld [vmem:[#allocation2 + $0x968] sm:$0xff] }
  0xca   :  { %2158 = vmatpush1.bf16.msra.mxu0 %v2157_v27  ;;  %v344_v27 = vld [vmem:[#allocation2 + $0x720] sm:$0xff] }
  0xcb   :  { %2354 = vmatpush1.bf16.msra.mxu1 %v2353_v28  ;;  %2160 = vmatprep.subr.bf16.mxu0 %v2159_v29  ;;  %v342_v28 = vld [vmem:[#allocation2 + $0x710] sm:$0xff]  ;;  %v2375_v29 = vpack.c.bf16 %v347_v22, %v343_v21  ;;  %v2181_v35 = vpack.c.bf16 %v344_v27, %v340_v26  ;;  %v2199_v22 = vpack.c.bf16 %v385_v16, %v381_v15  ;;  %v421_v15 = vld [vmem:[#allocation2 + $0x988] sm:$0xff] }
  0xcc   :  { %2356 = vmatprep.subr.bf16.mxu1 %v2355_v33  ;;  %v351_v33 = vld [vmem:[#allocation2 + $0x758] sm:$0xff]  ;;  %v2377_v36 = vpack.c.bf16 %v346_v30, %v342_v28  ;;  %v386_v27 = vld [vmem:[#allocation2 + $0x870] sm:$0xff]  ;;  %v389_v28 = vld [vmem:[#allocation2 + $0x888] sm:$0xff] }
  0xcd   :  { %v391_v30 = vld [vmem:[#allocation2 + $0x898] sm:$0xff]  ;;  %v425_v16 = vld [vmem:[#allocation2 + $0x9a8] sm:$0xff] }
  0xce   :  { %2162 = vmatpush1.bf16.msra.mxu0 %v2161_v39  ;;  %v352_v39 = vld [vmem:[#allocation2 + $0x760] sm:$0xff] }
  0xcf   :  { %2358 = vmatpush1.bf16.msra.mxu1 %v2357_v40  ;;  %2164 = vmatprep.subr.bf16.mxu0 %v2163_v41  ;;  %v350_v40 = vld [vmem:[#allocation2 + $0x750] sm:$0xff]  ;;  %v2379_v41 = vpack.c.bf16 %v355_v34, %v351_v33  ;;  %v2185_v47 = vpack.c.bf16 %v352_v39, %v348_v38  ;;  %v111_v34 = vld [vmem:[%s3194_s0 + $0x48] sm:$0xff]  ;;  %v392_v38 = vld [vmem:[#allocation2 + $0x8a0] sm:$0xff] }
  0xd0   :  { %2360 = vmatprep.subr.bf16.mxu1 %v2359_v45  ;;  %v359_v45 = vld [vmem:[#allocation2 + $0x798] sm:$0xff]  ;;  %v2381_v48 = vpack.c.bf16 %v354_v42, %v350_v40  ;;  %v390_v39 = vld [vmem:[#allocation2 + $0x890] sm:$0xff]  ;;  %v2399_v40 = vpack.c.bf16 %v395_v31, %v391_v30  ;;  %v397_v42 = vld [vmem:[#allocation2 + $0x8c8] sm:$0xff] }
  0xd1   :  { %v435_v30 = vld [vmem:[#allocation2 + $0x9f8] sm:$0xff] }
  0xd2   :  { %2166 = vmatpush1.bf16.msra.mxu0 %v2165_v51  ;;  %v360_v51 = vld [vmem:[#allocation2 + $0x7a0] sm:$0xff] }
  0xd3   :  { %2362 = vmatpush1.bf16.msra.mxu1 %v2361_v52  ;;  %2168 = vmatprep.subr.bf16.mxu0 %v2167_v53  ;;  %v358_v52 = vld [vmem:[#allocation2 + $0x790] sm:$0xff]  ;;  %v2383_v53 = vpack.c.bf16 %v363_v46, %v359_v45  ;;  %v2189_v59 = vpack.c.bf16 %v360_v51, %v356_v50  ;;  %v403_v45 = vld [vmem:[#allocation2 + $0x8f8] sm:$0xff]  ;;  %v107_v46 = vld [vmem:[%s3194_s0 + $0x28] sm:$0xff] }
  0xd4   :  { %2364 = vmatprep.subr.bf16.mxu1 %v2363_v57  ;;  %v367_v57 = vld [vmem:[#allocation2 + $0x7d8] sm:$0xff]  ;;  %v2385_v60 = vpack.c.bf16 %v362_v54, %v358_v52  ;;  %v396_v50 = vld [vmem:[#allocation2 + $0x8c0] sm:$0xff]  ;;  %v398_v52 = vld [vmem:[#allocation2 + $0x8d0] sm:$0xff] }
  0xd5   :  { %v400_v51 = vld [vmem:[#allocation2 + $0x8e0] sm:$0xff]  ;;  %v402_v54 = vld [vmem:[#allocation2 + $0x8f0] sm:$0xff] }
  0xd6   :  { %2170 = vmatpush1.bf16.msra.mxu0 %v2169_v63  ;;  %v368_v63 = vld [vmem:[#allocation2 + $0x7e0] sm:$0xff] }
  0xd7   :  { %2366 = vmatpush1.bf16.msra.mxu1 %v2365_v0  ;;  %2172 = vmatprep.subr.bf16.mxu0 %v2171_v1  ;;  %v366_v0 = vld [vmem:[#allocation2 + $0x7d0] sm:$0xff]  ;;  %v2387_v1 = vpack.c.bf16 %v371_v58, %v367_v57  ;;  %v2193_v7 = vpack.c.bf16 %v368_v63, %v364_v62  ;;  %v407_v57 = vld [vmem:[#allocation2 + $0x918] sm:$0xff]  ;;  %v404_v62 = vld [vmem:[#allocation2 + $0x900] sm:$0xff] }
  0xd8   :  { %2368 = vmatprep.subr.bf16.mxu1 %v2367_v5  ;;  %v375_v5 = vld [vmem:[#allocation2 + $0x818] sm:$0xff]  ;;  %v2389_v8 = vpack.c.bf16 %v370_v2, %v366_v0  ;;  %v408_v63 = vld [vmem:[#allocation2 + $0x920] sm:$0xff]  ;;  %v406_v0 = vld [vmem:[#allocation2 + $0x910] sm:$0xff] }
  0xd9   :  { %v411_v58 = vld [vmem:[#allocation2 + $0x938] sm:$0xff]  ;;  %v410_v2 = vld [vmem:[#allocation2 + $0x930] sm:$0xff] }
  0xda   :  { %2174 = vmatpush1.bf16.msra.mxu0 %v2173_v11  ;;  %v376_v11 = vld [vmem:[#allocation2 + $0x820] sm:$0xff] }
  0xdb   :  { %2370 = vmatpush1.bf16.msra.mxu1 %v2369_v12  ;;  %2176 = vmatprep.subr.bf16.mxu0 %v2175_v13  ;;  %v374_v12 = vld [vmem:[#allocation2 + $0x810] sm:$0xff]  ;;  %v2391_v13 = vpack.c.bf16 %v379_v6, %v375_v5  ;;  %v2197_v20 = vpack.c.bf16 %v376_v11, %v372_v10  ;;  %v415_v5 = vld [vmem:[#allocation2 + $0x958] sm:$0xff]  ;;  %v412_v10 = vld [vmem:[#allocation2 + $0x940] sm:$0xff] }
  0xdc   :  { %2372 = vmatprep.subr.bf16.mxu1 %v2371_v17  ;;  %v383_v17 = vld [vmem:[#allocation2 + $0x858] sm:$0xff]  ;;  %v2393_v21 = vpack.c.bf16 %v378_v14, %v374_v12  ;;  %v416_v11 = vld [vmem:[#allocation2 + $0x960] sm:$0xff]  ;;  %v414_v12 = vld [vmem:[#allocation2 + $0x950] sm:$0xff] }
  0xdd   :  { %v2395_v26 = vpack.c.bf16 %v387_v18, %v383_v17  ;;  %v419_v6 = vld [vmem:[#allocation2 + $0x978] sm:$0xff]  ;;  %v418_v14 = vld [vmem:[#allocation2 + $0x970] sm:$0xff] }
  0xde   :  { %2178 = vmatpush1.bf16.msra.mxu0 %v2177_v23  ;;  %v380_v23 = vld [vmem:[#allocation2 + $0x840] sm:$0xff]  ;;  %v423_v17 = vld [vmem:[#allocation2 + $0x998] sm:$0xff] }
  0xdf   :  { %2374 = vmatpush1.bf16.msra.mxu1 %v2373_v24  ;;  %2180 = vmatprep.subr.bf16.mxu0 %v2179_v25  ;;  %v384_v24 = vld [vmem:[#allocation2 + $0x860] sm:$0xff]  ;;  %v382_v25 = vld [vmem:[#allocation2 + $0x850] sm:$0xff]  ;;  %v427_v18 = vld [vmem:[#allocation2 + $0x9b8] sm:$0xff] }
  0xe0   :  { %2376 = vmatprep.subr.bf16.mxu1 %v2375_v29  ;;  %v393_v29 = vld [vmem:[#allocation2 + $0x8a8] sm:$0xff]  ;;  %v2201_v33 = vpack.c.bf16 %v384_v24, %v380_v23  ;;  %v424_v23 = vld [vmem:[#allocation2 + $0x9a0] sm:$0xff]  ;;  %v422_v24 = vld [vmem:[#allocation2 + $0x990] sm:$0xff] }
  0xe2   :  { %2182 = vmatpush1.bf16.msra.mxu0 %v2181_v35  ;;  %v2397_v35 = vpack.c.bf16 %v386_v27, %v382_v25  ;;  %v2415_v25 = vpack.c.bf16 %v427_v18, %v423_v17  ;;  %v429_v27 = vld [vmem:[#allocation2 + $0x9c8] sm:$0xff]  ;;  %v460_v18 = vld [vmem:[#allocation2 + $0xac0] sm:$0xff] }
  0xe3   :  { %2378 = vmatpush1.bf16.msra.mxu1 %v2377_v36  ;;  %2184 = vmatprep.subr.bf16.mxu0 %v2183_v37  ;;  %v2203_v36 = vpack.c.bf16 %v393_v29, %v389_v28  ;;  %v388_v37 = vld [vmem:[#allocation2 + $0x880] sm:$0xff]  ;;  %v433_v28 = vld [vmem:[#allocation2 + $0x9e8] sm:$0xff]  ;;  %v431_v29 = vld [vmem:[#allocation2 + $0x9d8] sm:$0xff] }
  0xe4   :  { %2380 = vmatprep.subr.bf16.mxu1 %v2379_v41  ;;  %v394_v41 = vld [vmem:[#allocation2 + $0x8b0] sm:$0xff] }
  0xe6   :  { %2186 = vmatpush1.bf16.msra.mxu0 %v2185_v47  ;;  %v2205_v47 = vpack.c.bf16 %v392_v38, %v388_v37  ;;  %v2419_v37 = vpack.c.bf16 %v435_v30, %v431_v29  ;;  %v434_v38 = vld [vmem:[#allocation2 + $0x9f0] sm:$0xff]  ;;  %v468_v30 = vld [vmem:[#allocation2 + $0xb00] sm:$0xff] }
  0xe7   :  { %2382 = vmatpush1.bf16.msra.mxu1 %v2381_v48  ;;  %2188 = vmatprep.subr.bf16.mxu0 %v2187_v49  ;;  %v2401_v48 = vpack.c.bf16 %v394_v41, %v390_v39  ;;  %v2207_v49 = vpack.c.bf16 %v401_v43, %v397_v42  ;;  %v437_v39 = vld [vmem:[#allocation2 + $0xa08] sm:$0xff]  ;;  %v439_v41 = vld [vmem:[#allocation2 + $0xa18] sm:$0xff] }
  0xe8   :  { %2384 = vmatprep.subr.bf16.mxu1 %v2383_v53  ;;  %v2403_v53 = vpack.c.bf16 %v403_v45, %v399_v44  ;;  %v443_v42 = vld [vmem:[#allocation2 + $0xa38] sm:$0xff] }
  0xea   :  { %2190 = vmatpush1.bf16.msra.mxu0 %v2189_v59  ;;  %v2209_v59 = vpack.c.bf16 %v400_v51, %v396_v50  ;;  %v442_v50 = vld [vmem:[#allocation2 + $0xa30] sm:$0xff]  ;;  %v445_v51 = vld [vmem:[#allocation2 + $0xa48] sm:$0xff] }
  0xeb   :  { %2386 = vmatpush1.bf16.msra.mxu1 %v2385_v60  ;;  %2192 = vmatprep.subr.bf16.mxu0 %v2191_v61  ;;  %v2405_v60 = vpack.c.bf16 %v402_v54, %v398_v52  ;;  %v2211_v61 = vpack.c.bf16 %v409_v56, %v405_v55  ;;  %v449_v52 = vld [vmem:[#allocation2 + $0xa68] sm:$0xff]  ;;  %v451_v54 = vld [vmem:[#allocation2 + $0xa78] sm:$0xff] }
  0xec   :  { %2388 = vmatprep.subr.bf16.mxu1 %v2387_v1  ;;  %v2407_v1 = vpack.c.bf16 %v411_v58, %v407_v57  ;;  %v2231_v57 = vpack.c.bf16 %v449_v52, %v445_v51  ;;  %v444_v58 = vld [vmem:[#allocation2 + $0xa40] sm:$0xff] }
  0xee   :  { %2194 = vmatpush1.bf16.msra.mxu0 %v2193_v7  ;;  %v2213_v7 = vpack.c.bf16 %v408_v63, %v404_v62  ;;  %v450_v62 = vld [vmem:[#allocation2 + $0xa70] sm:$0xff]  ;;  %v453_v63 = vld [vmem:[#allocation2 + $0xa88] sm:$0xff] }
  0xef   :  { %2390 = vmatpush1.bf16.msra.mxu1 %v2389_v8  ;;  %2196 = vmatprep.subr.bf16.mxu0 %v2195_v9  ;;  %v2409_v8 = vpack.c.bf16 %v410_v2, %v406_v0  ;;  %v2215_v9 = vpack.c.bf16 %v417_v4, %v413_v3  ;;  %v457_v0 = vld [vmem:[#allocation2 + $0xaa8] sm:$0xff]  ;;  %v459_v2 = vld [vmem:[#allocation2 + $0xab8] sm:$0xff] }
  0xf0   :  { %2392 = vmatprep.subr.bf16.mxu1 %v2391_v13  ;;  %v2411_v13 = vpack.c.bf16 %v419_v6, %v415_v5  ;;  %v2235_v5 = vpack.c.bf16 %v457_v0, %v453_v63  ;;  %v452_v6 = vld [vmem:[#allocation2 + $0xa80] sm:$0xff] }
  0xf1   :  { %679 = vmatmul.mubr.f32.vlgmr.msra.gmra.mrb[0].mxu0 %v104_v19 }
  0xf2   :  { %2198 = vmatpush1.bf16.msra.mxu0 %v2197_v20  ;;  %987 = vmatmul.mubr.f32.vlgmr.msra.gmra.mrb[0].mxu1 %v104_v19  ;;  %v2217_v19 = vpack.c.bf16 %v416_v11, %v412_v10  ;;  %v2413_v20 = vpack.c.bf16 %v418_v14, %v414_v12  ;;  %v458_v10 = vld [vmem:[#allocation2 + $0xab0] sm:$0xff]  ;;  %v461_v11 = vld [vmem:[#allocation2 + $0xac8] sm:$0xff]  ;;  %v467_v14 = vld [vmem:[#allocation2 + $0xaf8] sm:$0xff] }
  0xf3   :  { %2394 = vmatpush1.bf16.msra.mxu1 %v2393_v21  ;;  %2200 = vmatprep.subr.bf16.mxu0 %v2199_v22  ;;  %v2219_v21 = vpack.c.bf16 %v425_v16, %v421_v15  ;;  %v420_v22 = vld [vmem:[#allocation2 + $0x980] sm:$0xff]  ;;  %v465_v12 = vld [vmem:[#allocation2 + $0xae8] sm:$0xff] }
  0xf4   :  { %2396 = vmatprep.subr.bf16.mxu1 %v2395_v26  ;;  %684 = vmatprep.mubr.f32.mxu0 %v112_v32  ;;  %v426_v26 = vld [vmem:[#allocation2 + $0x9b0] sm:$0xff]  ;;  %v2221_v31 = vpack.c.bf16 %v424_v23, %v420_v22  ;;  %v2239_v17 = vpack.c.bf16 %v465_v12, %v461_v11  ;;  %v469_v23 = vld [vmem:[#allocation2 + $0xb08] sm:$0xff] }
  0xf5   :  { %992 = vmatprep.mubr.f32.mxu1 %v112_v32  ;;  %685 = vmatmul.mubr.f32.gmra.mrb[2].mxu0 %v111_v34  ;;  %v2417_v32 = vpack.c.bf16 %v426_v26, %v422_v24  ;;  %v466_v22 = vld [vmem:[#allocation2 + $0xaf0] sm:$0xff]  ;;  %v473_v24 = vld [vmem:[#allocation2 + $0xb28] sm:$0xff]  ;;  %v475_v26 = vld [vmem:[#allocation2 + $0xb38] sm:$0xff] }
  0xf6   :  { %2202 = vmatpush1.bf16.msra.mxu0 %v2201_v33  ;;  %993 = vmatmul.mubr.f32.gmra.mrb[2].mxu1 %v111_v34  ;;  %v2223_v33 = vpack.c.bf16 %v433_v28, %v429_v27  ;;  %v428_v34 = vld [vmem:[#allocation2 + $0x9c0] sm:$0xff]  ;;  %v2243_v29 = vpack.c.bf16 %v473_v24, %v469_v23 }
  0xf7   :  { %2398 = vmatpush1.bf16.msra.mxu1 %v2397_v35  ;;  %2204 = vmatprep.subr.bf16.mxu0 %v2203_v36  ;;  %v432_v35 = vld [vmem:[#allocation2 + $0x9e0] sm:$0xff]  ;;  %v430_v36 = vld [vmem:[#allocation2 + $0x9d0] sm:$0xff] }
  0xf8   :  { %2400 = vmatprep.subr.bf16.mxu1 %v2399_v40  ;;  %755 = vmatprep.mubr.f32.mxu0 %v107_v46  ;;  %v441_v40 = vld [vmem:[#allocation2 + $0xa28] sm:$0xff]  ;;  %v2225_v43 = vpack.c.bf16 %v432_v35, %v428_v34  ;;  %v2421_v44 = vpack.c.bf16 %v434_v38, %v430_v36  ;;  %v474_v34 = vld [vmem:[#allocation2 + $0xb30] sm:$0xff]  ;;  %v483_v38 = vld [vmem:[#allocation2 + $0xb78] sm:$0xff] }
  0xf9   :  { %1063 = vmatprep.mubr.f32.mxu1 %v107_v46  ;;  %v2227_v45 = vpack.c.bf16 %v441_v40, %v437_v39  ;;  %v436_v46 = vld [vmem:[#allocation2 + $0xa00] sm:$0xff]  ;;  %v477_v35 = vld [vmem:[#allocation2 + $0xb48] sm:$0xff] }
  0xfa   :  { %2206 = vmatpush1.bf16.msra.mxu0 %v2205_v47  ;;  %v440_v47 = vld [vmem:[#allocation2 + $0xa20] sm:$0xff]  ;;  %v481_v36 = vld [vmem:[#allocation2 + $0xb68] sm:$0xff] }
  0xfb   :  { %2402 = vmatpush1.bf16.msra.mxu1 %v2401_v48  ;;  %2208 = vmatprep.subr.bf16.mxu0 %v2207_v49  ;;  %v438_v48 = vld [vmem:[#allocation2 + $0xa10] sm:$0xff]  ;;  %v2423_v49 = vpack.c.bf16 %v443_v42, %v439_v41  ;;  %v2229_v55 = vpack.c.bf16 %v440_v47, %v436_v46  ;;  %v2247_v41 = vpack.c.bf16 %v481_v36, %v477_v35  ;;  %v476_v42 = vld [vmem:[#allocation2 + $0xb40] sm:$0xff]  ;;  %v485_v47 = vld [vmem:[#allocation2 + $0xb88] sm:$0xff]  ;;  %v2988_v36 = vmov 0.0  }
  0xfc   :  { %2404 = vmatprep.subr.bf16.mxu1 %v2403_v53  ;;  %v447_v53 = vld [vmem:[#allocation2 + $0xa58] sm:$0xff]  ;;  %v2425_v56 = vpack.c.bf16 %v442_v50, %v438_v48  ;;  %v482_v46 = vld [vmem:[#allocation2 + $0xb70] sm:$0xff]  ;;  %v489_v48 = vld [vmem:[#allocation2 + $0xba8] sm:$0xff] }
  0xfd   :  { %v491_v50 = vld [vmem:[#allocation2 + $0xbb8] sm:$0xff]  ;;  %v1174_v35 = vld [vmem:[#allocation6 + $0x68] sm:$0xff] }
  0xfe   :  { %2210 = vmatpush1.bf16.msra.mxu0 %v2209_v59  ;;  %v448_v59 = vld [vmem:[#allocation2 + $0xa60] sm:$0xff] }
  0xff   :  { %2406 = vmatpush1.bf16.msra.mxu1 %v2405_v60  ;;  %2212 = vmatprep.subr.bf16.mxu0 %v2211_v61  ;;  %v446_v60 = vld [vmem:[#allocation2 + $0xa50] sm:$0xff]  ;;  %v2427_v61 = vpack.c.bf16 %v451_v54, %v447_v53  ;;  %v2233_v3 = vpack.c.bf16 %v448_v59, %v444_v58  ;;  %v2251_v53 = vpack.c.bf16 %v489_v48, %v485_v47  ;;  %v484_v54 = vld [vmem:[#allocation2 + $0xb80] sm:$0xff]  ;;  %v493_v59 = vld [vmem:[#allocation2 + $0xbc8] sm:$0xff] }
 0x100   :  { %2408 = vmatprep.subr.bf16.mxu1 %v2407_v1  ;;  %v455_v1 = vld [vmem:[#allocation2 + $0xa98] sm:$0xff]  ;;  %v2429_v4 = vpack.c.bf16 %v450_v62, %v446_v60  ;;  %v490_v58 = vld [vmem:[#allocation2 + $0xbb0] sm:$0xff]  ;;  %v497_v60 = vld [vmem:[#allocation2 + $0xbe8] sm:$0xff] }
 0x101   :  { %v499_v62 = vld [vmem:[#allocation2 + $0xbf8] sm:$0xff]  ;;  %v1178_v48 = vld [vmem:[#allocation6 + $0x88] sm:$0xff] }
 0x102   :  { %2214 = vmatpush1.bf16.msra.mxu0 %v2213_v7  ;;  %v456_v7 = vld [vmem:[#allocation2 + $0xaa0] sm:$0xff]  ;;  %v1175_v47 = vld [vmem:[#allocation6 + $0x70] sm:$0xff] }
 0x103   :  { %2410 = vmatpush1.bf16.msra.mxu1 %v2409_v8  ;;  %2216 = vmatprep.subr.bf16.mxu0 %v2215_v9  ;;  %v454_v8 = vld [vmem:[#allocation2 + $0xa90] sm:$0xff]  ;;  %v2431_v9 = vpack.c.bf16 %v459_v2, %v455_v1  ;;  %v2237_v15 = vpack.c.bf16 %v456_v7, %v452_v6  ;;  %v2255_v1 = vpack.c.bf16 %v497_v60, %v493_v59  ;;  %v492_v2 = vld [vmem:[#allocation2 + $0xbc0] sm:$0xff]  ;;  %v501_v7 = vld [vmem:[#allocation2 + $0xc08] sm:$0xff] }
 0x104   :  { %2412 = vmatprep.subr.bf16.mxu1 %v2411_v13  ;;  %v463_v13 = vld [vmem:[#allocation2 + $0xad8] sm:$0xff]  ;;  %v2433_v16 = vpack.c.bf16 %v458_v10, %v454_v8  ;;  %v498_v6 = vld [vmem:[#allocation2 + $0xbf0] sm:$0xff]  ;;  %v505_v8 = vld [vmem:[#allocation2 + $0xc28] sm:$0xff] }
 0x105   :  { %v507_v10 = vld [vmem:[#allocation2 + $0xc38] sm:$0xff] }
 0x106   :  { %2218 = vmatpush1.bf16.msra.mxu0 %v2217_v19  ;;  %v464_v19 = vld [vmem:[#allocation2 + $0xae0] sm:$0xff]  ;;  %v1183_v60 = vld [vmem:[#allocation6 + $0xb0] sm:$0xff] }
 0x107   :  { %2414 = vmatpush1.bf16.msra.mxu1 %v2413_v20  ;;  %2220 = vmatprep.subr.bf16.mxu0 %v2219_v21  ;;  %v462_v20 = vld [vmem:[#allocation2 + $0xad0] sm:$0xff]  ;;  %v2435_v21 = vpack.c.bf16 %v467_v14, %v463_v13  ;;  %v2241_v27 = vpack.c.bf16 %v464_v19, %v460_v18  ;;  %v2259_v13 = vpack.c.bf16 %v505_v8, %v501_v7  ;;  %v500_v14 = vld [vmem:[#allocation2 + $0xc00] sm:$0xff] }
 0x108   :  { %2416 = vmatprep.subr.bf16.mxu1 %v2415_v25  ;;  %v471_v25 = vld [vmem:[#allocation2 + $0xb18] sm:$0xff]  ;;  %v2437_v28 = vpack.c.bf16 %v466_v22, %v462_v20  ;;  %v506_v18 = vld [vmem:[#allocation2 + $0xc30] sm:$0xff] }
 0x109   :  { %v1162_v19 = vld [vmem:[#allocation6 + $0x8] sm:$0xff]  ;;  %v1164_v23 = vld [vmem:[#allocation6 + $0x18] sm:$0xff]  ;;  %v1191_v8 = vld [vmem:[#allocation6 + $0xf0] sm:$0xff] }
 0x10a   :  { %2222 = vmatpush1.bf16.msra.mxu0 %v2221_v31  ;;  %v472_v31 = vld [vmem:[#allocation2 + $0xb20] sm:$0xff]  ;;  %v1166_v20 = vld [vmem:[#allocation6 + $0x28] sm:$0xff] }
 0x10b   :  { %2418 = vmatpush1.bf16.msra.mxu1 %v2417_v32  ;;  %2224 = vmatprep.subr.bf16.mxu0 %v2223_v33  ;;  %v470_v32 = vld [vmem:[#allocation2 + $0xb10] sm:$0xff]  ;;  %v2439_v33 = vpack.c.bf16 %v475_v26, %v471_v25  ;;  %v2245_v39 = vpack.c.bf16 %v472_v31, %v468_v30  ;;  %v1168_v24 = vld [vmem:[#allocation6 + $0x38] sm:$0xff]  ;;  %v1161_v30 = vld [vmem:[#allocation6] sm:$0xff] }
 0x10c   :  { %2420 = vmatprep.subr.bf16.mxu1 %v2419_v37  ;;  %v479_v37 = vld [vmem:[#allocation2 + $0xb58] sm:$0xff]  ;;  %v2441_v40 = vpack.c.bf16 %v474_v34, %v470_v32  ;;  %v114_v25 = vld [vmem:[%s3194_s0 + $0x60] sm:$0xff]  ;;  %v1170_v34 = vld [vmem:[#allocation6 + $0x48] sm:$0xff] }
 0x10d   :  { %v1165_v31 = vld [vmem:[#allocation6 + $0x20] sm:$0xff]  ;;  %v1163_v32 = vld [vmem:[#allocation6 + $0x10] sm:$0xff] }
 0x10e   :  { %2226 = vmatpush1.bf16.msra.mxu0 %v2225_v43  ;;  %v480_v43 = vld [vmem:[#allocation2 + $0xb60] sm:$0xff] }
 0x10f   :  { %2422 = vmatpush1.bf16.msra.mxu1 %v2421_v44  ;;  %2228 = vmatprep.subr.bf16.mxu0 %v2227_v45  ;;  %v478_v44 = vld [vmem:[#allocation2 + $0xb50] sm:$0xff]  ;;  %v2443_v45 = vpack.c.bf16 %v483_v38, %v479_v37  ;;  %v2249_v51 = vpack.c.bf16 %v480_v43, %v476_v42  ;;  %v1172_v38 = vld [vmem:[#allocation6 + $0x58] sm:$0xff]  ;;  %v2463_v42 = vpack.c.bf16 %v1174_v35, %v1170_v34  ;;  %v1169_v43 = vld [vmem:[#allocation6 + $0x40] sm:$0xff] }
 0x110   :  { %2424 = vmatprep.subr.bf16.mxu1 %v2423_v49  ;;  %v487_v49 = vld [vmem:[#allocation2 + $0xb98] sm:$0xff]  ;;  %v2445_v52 = vpack.c.bf16 %v482_v46, %v478_v44  ;;  %v108_v37 = vld [vmem:[%s3194_s0 + $0x30] sm:$0xff]  ;;  %v1173_v44 = vld [vmem:[#allocation6 + $0x60] sm:$0xff] }
 0x111   :  { %v1214_v34 = vld [vmem:[#allocation6 + $0x1a8] sm:$0xff]  ;;  %v1212_v35 = vld [vmem:[#allocation6 + $0x198] sm:$0xff] }
 0x112   :  { %2230 = vmatpush1.bf16.msra.mxu0 %v2229_v55  ;;  %v488_v55 = vld [vmem:[#allocation2 + $0xba0] sm:$0xff] }
 0x113   :  { %2426 = vmatpush1.bf16.msra.mxu1 %v2425_v56  ;;  %2232 = vmatprep.subr.bf16.mxu0 %v2231_v57  ;;  %v486_v56 = vld [vmem:[#allocation2 + $0xb90] sm:$0xff]  ;;  %v2447_v57 = vpack.c.bf16 %v491_v50, %v487_v49  ;;  %v2253_v63 = vpack.c.bf16 %v488_v55, %v484_v54  ;;  %v115_v50 = vld [vmem:[%s3194_s0 + $0x68] sm:$0xff] }
 0x114   :  { %2428 = vmatprep.subr.bf16.mxu1 %v2427_v61  ;;  %v495_v61 = vld [vmem:[#allocation2 + $0xbd8] sm:$0xff]  ;;  %v2449_v0 = vpack.c.bf16 %v490_v58, %v486_v56  ;;  %v1182_v49 = vld [vmem:[#allocation6 + $0xa8] sm:$0xff]  ;;  %v1177_v56 = vld [vmem:[#allocation6 + $0x80] sm:$0xff] }
 0x115   :  { %v2467_v55 = vpack.c.bf16 %v1182_v49, %v1178_v48  ;;  %v1179_v58 = vld [vmem:[#allocation6 + $0x90] sm:$0xff]  ;;  %v1224_v48 = vld [vmem:[#allocation6 + $0x1f8] sm:$0xff] }
 0x116   :  { %2234 = vmatpush1.bf16.msra.mxu0 %v2233_v3  ;;  %v496_v3 = vld [vmem:[#allocation2 + $0xbe0] sm:$0xff] }
 0x117   :  { %2430 = vmatpush1.bf16.msra.mxu1 %v2429_v4  ;;  %2236 = vmatprep.subr.bf16.mxu0 %v2235_v5  ;;  %v494_v4 = vld [vmem:[#allocation2 + $0xbd0] sm:$0xff]  ;;  %v2451_v5 = vpack.c.bf16 %v499_v62, %v495_v61  ;;  %v2257_v11 = vpack.c.bf16 %v496_v3, %v492_v2  ;;  %v2597_v2 = vpack.c.bf16 %v1183_v60, %v1179_v58  ;;  %v1232_v60 = vld [vmem:[#allocation6 + $0x238] sm:$0xff] }
 0x118   :  { %2432 = vmatprep.subr.bf16.mxu1 %v2431_v9  ;;  %v503_v9 = vld [vmem:[#allocation2 + $0xc18] sm:$0xff]  ;;  %v2453_v12 = vpack.c.bf16 %v498_v6, %v494_v4  ;;  %v1186_v61 = vld [vmem:[#allocation6 + $0xc8] sm:$0xff]  ;;  %v1185_v4 = vld [vmem:[#allocation6 + $0xc0] sm:$0xff] }
 0x119   :  { %v1190_v62 = vld [vmem:[#allocation6 + $0xe8] sm:$0xff]  ;;  %v1187_v6 = vld [vmem:[#allocation6 + $0xd0] sm:$0xff] }
 0x11a   :  { %2238 = vmatpush1.bf16.msra.mxu0 %v2237_v15  ;;  %v504_v15 = vld [vmem:[#allocation2 + $0xc20] sm:$0xff]  ;;  %v2471_v3 = vpack.c.bf16 %v1190_v62, %v1186_v61  ;;  %v1230_v58 = vld [vmem:[#allocation6 + $0x228] sm:$0xff] }
 0x11b   :  { %2434 = vmatpush1.bf16.msra.mxu1 %v2433_v16  ;;  %2240 = vmatprep.subr.bf16.mxu0 %v2239_v17  ;;  %v2455_v16 = vpack.c.bf16 %v507_v10, %v503_v9  ;;  %v502_v17 = vld [vmem:[#allocation2 + $0xc10] sm:$0xff]  ;;  %v2261_v22 = vpack.c.bf16 %v504_v15, %v500_v14  ;;  %v2601_v14 = vpack.c.bf16 %v1191_v8, %v1187_v6  ;;  %v1240_v8 = vld [vmem:[#allocation6 + $0x278] sm:$0xff] }
 0x11c   :  { %2436 = vmatprep.subr.bf16.mxu1 %v2435_v21  ;;  %v106_v21 = vld [vmem:[%s3194_s0 + $0x20] sm:$0xff]  ;;  %v2457_v26 = vpack.c.bf16 %v506_v18, %v502_v17  ;;  %v1194_v9 = vld [vmem:[#allocation6 + $0x108] sm:$0xff]  ;;  %v1195_v18 = vld [vmem:[#allocation6 + $0x110] sm:$0xff] }
 0x11d   :  { %v1198_v10 = vld [vmem:[#allocation6 + $0x128] sm:$0xff]  ;;  %v1197_v17 = vld [vmem:[#allocation6 + $0x120] sm:$0xff] }
 0x11e   :  { %2242 = vmatpush1.bf16.msra.mxu0 %v2241_v27  ;;  %v2459_v27 = vpack.c.bf16 %v1166_v20, %v1162_v19  ;;  %v2475_v15 = vpack.c.bf16 %v1198_v10, %v1194_v9  ;;  %v1199_v20 = vld [vmem:[#allocation6 + $0x130] sm:$0xff]  ;;  %v1238_v6 = vld [vmem:[#allocation6 + $0x268] sm:$0xff] }
 0x11f   :  { %2438 = vmatpush1.bf16.msra.mxu1 %v2437_v28  ;;  %2244 = vmatprep.subr.bf16.mxu0 %v2243_v29  ;;  %v2587_v28 = vpack.c.bf16 %v1168_v24, %v1164_v23  ;;  %v113_v29 = vld [vmem:[%s3194_s0 + $0x58] sm:$0xff] }
 0x120   :  { %2440 = vmatprep.subr.bf16.mxu1 %v2439_v33  ;;  %v1167_v33 = vld [vmem:[#allocation6 + $0x30] sm:$0xff]  ;;  %v1204_v23 = vld [vmem:[#allocation6 + $0x158] sm:$0xff] }
 0x121   :  { %v1208_v24 = vld [vmem:[#allocation6 + $0x178] sm:$0xff] }
 0x122   :  { %2246 = vmatpush1.bf16.msra.mxu0 %v2245_v39  ;;  %v1176_v39 = vld [vmem:[#allocation6 + $0x78] sm:$0xff] }
 0x123   :  { %2442 = vmatpush1.bf16.msra.mxu1 %v2441_v40  ;;  %2248 = vmatprep.subr.bf16.mxu0 %v2247_v41  ;;  %v2461_v40 = vpack.c.bf16 %v1165_v31, %v1161_v30  ;;  %v2589_v41 = vpack.c.bf16 %v1167_v33, %v1163_v32  ;;  %v2591_v46 = vpack.c.bf16 %v1176_v39, %v1172_v38  ;;  %v1203_v30 = vld [vmem:[#allocation6 + $0x150] sm:$0xff]  ;;  %v1210_v33 = vld [vmem:[#allocation6 + $0x188] sm:$0xff] }
 0x124   :  { %2444 = vmatprep.subr.bf16.mxu1 %v2443_v45  ;;  %v1171_v45 = vld [vmem:[#allocation6 + $0x50] sm:$0xff]  ;;  %v2607_v31 = vpack.c.bf16 %v1208_v24, %v1204_v23  ;;  %v2483_v39 = vpack.c.bf16 %v1214_v34, %v1210_v33  ;;  %v1241_v24 = vld [vmem:[#allocation6 + $0x280] sm:$0xff] }
 0x125   :  { %v2593_v54 = vpack.c.bf16 %v1175_v47, %v1171_v45  ;;  %v1207_v32 = vld [vmem:[#allocation6 + $0x170] sm:$0xff]  ;;  %v1218_v45 = vld [vmem:[#allocation6 + $0x1c8] sm:$0xff]  ;;  %v1220_v47 = vld [vmem:[#allocation6 + $0x1d8] sm:$0xff] }
 0x126   :  { %2250 = vmatpush1.bf16.msra.mxu0 %v2249_v51  ;;  %v1180_v51 = vld [vmem:[#allocation6 + $0x98] sm:$0xff]  ;;  %v2609_v38 = vpack.c.bf16 %v1207_v32, %v1203_v30  ;;  %v1254_v30 = vld [vmem:[#allocation6 + $0x2e8] sm:$0xff] }
 0x127   :  { %2446 = vmatpush1.bf16.msra.mxu1 %v2445_v52  ;;  %2252 = vmatprep.subr.bf16.mxu0 %v2251_v53  ;;  %v1184_v52 = vld [vmem:[#allocation6 + $0xb8] sm:$0xff]  ;;  %v2465_v53 = vpack.c.bf16 %v1173_v44, %v1169_v43  ;;  %v1215_v44 = vld [vmem:[#allocation6 + $0x1b0] sm:$0xff] }
 0x128   :  { %2448 = vmatprep.subr.bf16.mxu1 %v2447_v57  ;;  %v1181_v57 = vld [vmem:[#allocation6 + $0xa0] sm:$0xff]  ;;  %v2595_v59 = vpack.c.bf16 %v1184_v52, %v1180_v51  ;;  %v1256_v32 = vld [vmem:[#allocation6 + $0x2f8] sm:$0xff] }
 0x129   :  { %v1217_v52 = vld [vmem:[#allocation6 + $0x1c0] sm:$0xff] }
 0x12a   :  { %2254 = vmatpush1.bf16.msra.mxu0 %v2253_v63  ;;  %v1188_v63 = vld [vmem:[#allocation6 + $0xd8] sm:$0xff] }
 0x12b   :  { %2450 = vmatpush1.bf16.msra.mxu1 %v2449_v0  ;;  %2256 = vmatprep.subr.bf16.mxu0 %v2255_v1  ;;  %v1192_v0 = vld [vmem:[#allocation6 + $0xf8] sm:$0xff]  ;;  %v2469_v1 = vpack.c.bf16 %v1181_v57, %v1177_v56  ;;  %v1223_v56 = vld [vmem:[#allocation6 + $0x1f0] sm:$0xff]  ;;  %v1226_v57 = vld [vmem:[#allocation6 + $0x208] sm:$0xff] }
 0x12c   :  { %2452 = vmatprep.subr.bf16.mxu1 %v2451_v5  ;;  %v1189_v5 = vld [vmem:[#allocation6 + $0xe0] sm:$0xff]  ;;  %v2599_v7 = vpack.c.bf16 %v1192_v0, %v1188_v63  ;;  %v2491_v63 = vpack.c.bf16 %v1230_v58, %v1226_v57 }
 0x12d   :  { %v1225_v0 = vld [vmem:[#allocation6 + $0x200] sm:$0xff] }
 0x12e   :  { %2258 = vmatpush1.bf16.msra.mxu0 %v2257_v11  ;;  %v1196_v11 = vld [vmem:[#allocation6 + $0x118] sm:$0xff] }
 0x12f   :  { %2454 = vmatpush1.bf16.msra.mxu1 %v2453_v12  ;;  %2260 = vmatprep.subr.bf16.mxu0 %v2259_v13  ;;  %v1200_v12 = vld [vmem:[#allocation6 + $0x138] sm:$0xff]  ;;  %v2473_v13 = vpack.c.bf16 %v1189_v5, %v1185_v4  ;;  %v1231_v4 = vld [vmem:[#allocation6 + $0x230] sm:$0xff]  ;;  %v1234_v5 = vld [vmem:[#allocation6 + $0x248] sm:$0xff] }
 0x130   :  { %2456 = vmatprep.subr.bf16.mxu1 %v2455_v16  ;;  %v1193_v16 = vld [vmem:[#allocation6 + $0x100] sm:$0xff]  ;;  %v2603_v19 = vpack.c.bf16 %v1200_v12, %v1196_v11  ;;  %v2495_v11 = vpack.c.bf16 %v1238_v6, %v1234_v5 }
 0x131   :  { %756 = vmatmul.mubr.f32.vlgmr.msra.gmra.mrb[0].mxu0 %v106_v21  ;;  %v1233_v12 = vld [vmem:[#allocation6 + $0x240] sm:$0xff] }
 0x132   :  { %1064 = vmatmul.mubr.f32.vlgmr.msra.gmra.mrb[0].mxu1 %v106_v21  ;;  %2262 = vmatpush1.bf16.msra.mxu0 %v2261_v22  ;;  %v1202_v21 = vld [vmem:[#allocation6 + $0x148] sm:$0xff] }
 0x133   :  { %761 = vmatprep.mubr.f32.mxu0 %v114_v25  ;;  %1069 = vmatprep.mubr.f32.mxu1 %v114_v25  ;;  %v1206_v22 = vld [vmem:[#allocation6 + $0x168] sm:$0xff]  ;;  %v2477_v25 = vpack.c.bf16 %v1197_v17, %v1193_v16  ;;  %v1239_v16 = vld [vmem:[#allocation6 + $0x270] sm:$0xff] }
 0x134   :  { %2458 = vmatpush1.bf16.msra.mxu1 %v2457_v26  ;;  %2460 = vmatprep.subr.bf16.mxu0 %v2459_v27  ;;  %v2605_v26 = vpack.c.bf16 %v1199_v20, %v1195_v18  ;;  %v2479_v27 = vpack.c.bf16 %v1206_v22, %v1202_v21  ;;  %v1242_v17 = vld [vmem:[#allocation6 + $0x288] sm:$0xff]  ;;  %v1248_v20 = vld [vmem:[#allocation6 + $0x2b8] sm:$0xff] }
 0x135   :  { %762 = vmatmul.mubr.f32.gmra.mrb[2].mxu0 %v113_v29  ;;  %2588 = vmatprep.subr.bf16.mxu1 %v2587_v28  ;;  %v1201_v28 = vld [vmem:[#allocation6 + $0x140] sm:$0xff]  ;;  %v1246_v18 = vld [vmem:[#allocation6 + $0x2a8] sm:$0xff] }
 0x136   :  { %1070 = vmatmul.mubr.f32.gmra.mrb[2].mxu1 %v113_v29  ;;  %832 = vmatprep.mubr.f32.mxu0 %v2988_v36  ;;  %v1205_v29 = vld [vmem:[#allocation6 + $0x160] sm:$0xff]  ;;  %v2499_v23 = vpack.c.bf16 %v1246_v18, %v1242_v17  ;;  %v1284_v17 = vld [vmem:[#allocation6 + $0x3d8] sm:$0xff] }
 0x137   :  { %1140 = vmatprep.mubr.f32.mxu1 %v2988_v36 }
 0x139   :  { %1986 = vmatmul.mubr.msk.f32.vlgmr.msra.gmra.mrb[0].mxu0 %vm530_vm0, %v108_v37 }
 0x13a   :  { %1988 = vmatmul.mubr.msk.f32.vlgmr.msra.gmra.mrb[0].mxu1 %vm530_vm0, %v108_v37  ;;  %838 = vmatprep.mubr.f32.mxu0 %v2988_v36  ;;  %v2481_v37 = vpack.c.bf16 %v1205_v29, %v1201_v28  ;;  %v1247_v28 = vld [vmem:[#allocation6 + $0x2b0] sm:$0xff]  ;;  %v1250_v29 = vld [vmem:[#allocation6 + $0x2c8] sm:$0xff] }
 0x13b   :  { %1146 = vmatprep.mubr.f32.mxu1 %v2988_v36  ;;  %2462 = vmatpush1.bf16.msra.mxu0 %v2461_v40  ;;  %v1216_v36 = vld [vmem:[#allocation6 + $0x1b8] sm:$0xff]  ;;  %v1209_v40 = vld [vmem:[#allocation6 + $0x180] sm:$0xff] }
 0x13c   :  { %2590 = vmatpush1.bf16.msra.mxu1 %v2589_v41  ;;  %2464 = vmatprep.subr.bf16.mxu0 %v2463_v42  ;;  %v1213_v41 = vld [vmem:[#allocation6 + $0x1a0] sm:$0xff]  ;;  %v1211_v42 = vld [vmem:[#allocation6 + $0x190] sm:$0xff]  ;;  %v2611_v43 = vpack.c.bf16 %v1216_v36, %v1212_v35  ;;  %v2503_v35 = vpack.c.bf16 %v1254_v30, %v1250_v29  ;;  %v1292_v29 = vld [vmem:[#allocation6 + $0x418] sm:$0xff] }
 0x13d   :  { %1987 = vmatmul.mubr.msk.f32.gmra.mrb[2].mxu0 %vm530_vm0, %v115_v50  ;;  %2592 = vmatprep.subr.bf16.mxu1 %v2591_v46  ;;  %v1222_v46 = vld [vmem:[#allocation6 + $0x1e8] sm:$0xff]  ;;  %v2485_v49 = vpack.c.bf16 %v1213_v41, %v1209_v40  ;;  %v1249_v36 = vld [vmem:[#allocation6 + $0x2c0] sm:$0xff]  ;;  %v1255_v40 = vld [vmem:[#allocation6 + $0x2f0] sm:$0xff] }
 0x13e   :  { %1989 = vmatmul.mubr.msk.f32.gmra.mrb[2].mxu1 %vm530_vm0, %v115_v50  ;;  %v2613_v50 = vpack.c.bf16 %v1215_v44, %v1211_v42  ;;  %v2487_v51 = vpack.c.bf16 %v1222_v46, %v1218_v45  ;;  %v1258_v41 = vld [vmem:[#allocation6 + $0x308] sm:$0xff]  ;;  %v1264_v44 = vld [vmem:[#allocation6 + $0x338] sm:$0xff] }
 0x13f   :  { %2466 = vmatpush1.bf16.msra.mxu0 %v2465_v53  ;;  %v1221_v53 = vld [vmem:[#allocation6 + $0x1e0] sm:$0xff]  ;;  %v1262_v42 = vld [vmem:[#allocation6 + $0x328] sm:$0xff] }
 0x140   :  { %2594 = vmatpush1.bf16.msra.mxu1 %v2593_v54  ;;  %2468 = vmatprep.subr.bf16.mxu0 %v2467_v55  ;;  %v1219_v54 = vld [vmem:[#allocation6 + $0x1d0] sm:$0xff]  ;;  %v2615_v55 = vpack.c.bf16 %v1224_v48, %v1220_v47  ;;  %v2489_v61 = vpack.c.bf16 %v1221_v53, %v1217_v52  ;;  %v2507_v47 = vpack.c.bf16 %v1262_v42, %v1258_v41  ;;  %v1257_v48 = vld [vmem:[#allocation6 + $0x300] sm:$0xff]  ;;  %v1266_v53 = vld [vmem:[#allocation6 + $0x348] sm:$0xff] }
 0x141   :  { %2596 = vmatprep.subr.bf16.mxu1 %v2595_v59  ;;  %v1228_v59 = vld [vmem:[#allocation6 + $0x218] sm:$0xff]  ;;  %v2617_v62 = vpack.c.bf16 %v1223_v56, %v1219_v54  ;;  %v1263_v52 = vld [vmem:[#allocation6 + $0x330] sm:$0xff]  ;;  %v1270_v54 = vld [vmem:[#allocation6 + $0x368] sm:$0xff] }
 0x142   :  { %v1272_v56 = vld [vmem:[#allocation6 + $0x378] sm:$0xff]  ;;  %v1289_v42 = vld [vmem:[#allocation6 + $0x400] sm:$0xff] }
 0x143   :  { %2470 = vmatpush1.bf16.msra.mxu0 %v2469_v1  ;;  %v1229_v1 = vld [vmem:[#allocation6 + $0x220] sm:$0xff] }
 0x144   :  { %2598 = vmatpush1.bf16.msra.mxu1 %v2597_v2  ;;  %2472 = vmatprep.subr.bf16.mxu0 %v2471_v3  ;;  %v1227_v2 = vld [vmem:[#allocation6 + $0x210] sm:$0xff]  ;;  %v2619_v3 = vpack.c.bf16 %v1232_v60, %v1228_v59  ;;  %v2493_v9 = vpack.c.bf16 %v1229_v1, %v1225_v0  ;;  %v2511_v59 = vpack.c.bf16 %v1270_v54, %v1266_v53  ;;  %v1265_v60 = vld [vmem:[#allocation6 + $0x340] sm:$0xff]  ;;  %v1274_v1 = vld [vmem:[#allocation6 + $0x388] sm:$0xff] }
 0x145   :  { %2600 = vmatprep.subr.bf16.mxu1 %v2599_v7  ;;  %v1236_v7 = vld [vmem:[#allocation6 + $0x258] sm:$0xff]  ;;  %v2621_v10 = vpack.c.bf16 %v1231_v4, %v1227_v2  ;;  %v1271_v0 = vld [vmem:[#allocation6 + $0x370] sm:$0xff]  ;;  %v1278_v2 = vld [vmem:[#allocation6 + $0x3a8] sm:$0xff] }
 0x146   :  { %v1280_v4 = vld [vmem:[#allocation6 + $0x3b8] sm:$0xff] }
 0x147   :  { %2474 = vmatpush1.bf16.msra.mxu0 %v2473_v13  ;;  %v1237_v13 = vld [vmem:[#allocation6 + $0x260] sm:$0xff]  ;;  %v1300_v53 = vld [vmem:[#allocation6 + $0x458] sm:$0xff] }
 0x148   :  { %2602 = vmatpush1.bf16.msra.mxu1 %v2601_v14  ;;  %2476 = vmatprep.subr.bf16.mxu0 %v2475_v15  ;;  %v1235_v14 = vld [vmem:[#allocation6 + $0x250] sm:$0xff]  ;;  %v2623_v15 = vpack.c.bf16 %v1240_v8, %v1236_v7  ;;  %v2497_v21 = vpack.c.bf16 %v1237_v13, %v1233_v12  ;;  %v2515_v7 = vpack.c.bf16 %v1278_v2, %v1274_v1  ;;  %v1273_v8 = vld [vmem:[#allocation6 + $0x380] sm:$0xff]  ;;  %v1304_v54 = vld [vmem:[#allocation6 + $0x478] sm:$0xff] }
 0x149   :  { %2604 = vmatprep.subr.bf16.mxu1 %v2603_v19  ;;  %v1244_v19 = vld [vmem:[#allocation6 + $0x298] sm:$0xff]  ;;  %v2625_v22 = vpack.c.bf16 %v1239_v16, %v1235_v14  ;;  %v1279_v12 = vld [vmem:[#allocation6 + $0x3b0] sm:$0xff]  ;;  %v1286_v16 = vld [vmem:[#allocation6 + $0x3e8] sm:$0xff]  ;;  %v2655_v2 = vpack.c.bf16 %v1304_v54, %v1300_v53 }
 0x14a   :  { %v1327_v53 = vld [vmem:[#allocation6 + $0x530] sm:$0xff]  ;;  %v1330_v54 = vld [vmem:[#allocation6 + $0x548] sm:$0xff] }
 0x14b   :  { %2478 = vmatpush1.bf16.msra.mxu0 %v2477_v25  ;;  %v1245_v25 = vld [vmem:[#allocation6 + $0x2a0] sm:$0xff] }
 0x14c   :  { %2606 = vmatpush1.bf16.msra.mxu1 %v2605_v26  ;;  %2480 = vmatprep.subr.bf16.mxu0 %v2479_v27  ;;  %v1243_v26 = vld [vmem:[#allocation6 + $0x290] sm:$0xff]  ;;  %v2627_v27 = vpack.c.bf16 %v1248_v20, %v1244_v19  ;;  %v2501_v33 = vpack.c.bf16 %v1245_v25, %v1241_v24  ;;  %v1288_v19 = vld [vmem:[#allocation6 + $0x3f8] sm:$0xff]  ;;  %v1281_v20 = vld [vmem:[#allocation6 + $0x3c0] sm:$0xff] }
 0x14d   :  { %2608 = vmatprep.subr.bf16.mxu1 %v2607_v31  ;;  %v1252_v31 = vld [vmem:[#allocation6 + $0x2d8] sm:$0xff]  ;;  %v2629_v34 = vpack.c.bf16 %v1247_v28, %v1243_v26  ;;  %v1283_v24 = vld [vmem:[#allocation6 + $0x3d0] sm:$0xff]  ;;  %v1294_v28 = vld [vmem:[#allocation6 + $0x428] sm:$0xff] }
 0x14e   :  { %v1287_v25 = vld [vmem:[#allocation6 + $0x3f0] sm:$0xff] }
 0x14f   :  { %2482 = vmatpush1.bf16.msra.mxu0 %v2481_v37  ;;  %v1253_v37 = vld [vmem:[#allocation6 + $0x2e0] sm:$0xff]  ;;  %v2649_v26 = vpack.c.bf16 %v1287_v25, %v1283_v24  ;;  %v1318_v24 = vld [vmem:[#allocation6 + $0x4e8] sm:$0xff]  ;;  %v1316_v25 = vld [vmem:[#allocation6 + $0x4d8] sm:$0xff] }
 0x150   :  { %2610 = vmatpush1.bf16.msra.mxu1 %v2609_v38  ;;  %2484 = vmatprep.subr.bf16.mxu0 %v2483_v39  ;;  %v1251_v38 = vld [vmem:[#allocation6 + $0x2d0] sm:$0xff]  ;;  %v2631_v39 = vpack.c.bf16 %v1256_v32, %v1252_v31  ;;  %v2505_v45 = vpack.c.bf16 %v1253_v37, %v1249_v36  ;;  %v1296_v31 = vld [vmem:[#allocation6 + $0x438] sm:$0xff] }
 0x151   :  { %2612 = vmatprep.subr.bf16.mxu1 %v2611_v43  ;;  %v1260_v43 = vld [vmem:[#allocation6 + $0x318] sm:$0xff]  ;;  %v2633_v46 = vpack.c.bf16 %v1255_v40, %v1251_v38  ;;  %v2651_v32 = vpack.c.bf16 %v1296_v31, %v1292_v29  ;;  %v1317_v31 = vld [vmem:[#allocation6 + $0x4e0] sm:$0xff] }
 0x152   :  { %v3150_v36 = vld [vmem:[#allocation4] sm:$0xf] }
 0x153   :  { %2486 = vmatpush1.bf16.msra.mxu0 %v2485_v49  ;;  %v1261_v49 = vld [vmem:[#allocation6 + $0x320] sm:$0xff] }
 0x154   :  { %2614 = vmatpush1.bf16.msra.mxu1 %v2613_v50  ;;  %2488 = vmatprep.subr.bf16.mxu0 %v2487_v51  ;;  %v1259_v50 = vld [vmem:[#allocation6 + $0x310] sm:$0xff]  ;;  %v2635_v51 = vpack.c.bf16 %v1264_v44, %v1260_v43  ;;  %v2509_v57 = vpack.c.bf16 %v1261_v49, %v1257_v48  ;;  %v1293_v43 = vld [vmem:[#allocation6 + $0x420] sm:$0xff]  ;;  %v1298_v49 = vld [vmem:[#allocation6 + $0x448] sm:$0xff] }
 0x155   :  { %2616 = vmatprep.subr.bf16.mxu1 %v2615_v55  ;;  %v1268_v55 = vld [vmem:[#allocation6 + $0x358] sm:$0xff]  ;;  %v2637_v58 = vpack.c.bf16 %v1263_v52, %v1259_v50  ;;  %v1295_v48 = vld [vmem:[#allocation6 + $0x430] sm:$0xff]  ;;  %v1302_v52 = vld [vmem:[#allocation6 + $0x468] sm:$0xff] }
 0x156   :  { %v2527_v1 = vpack.c.bf16 %v1302_v52, %v1298_v49  ;;  %v1325_v49 = vld [vmem:[#allocation6 + $0x520] sm:$0xff]  ;;  %v1323_v52 = vld [vmem:[#allocation6 + $0x510] sm:$0xff] }
 0x157   :  { %2490 = vmatpush1.bf16.msra.mxu0 %v2489_v61  ;;  %v1269_v61 = vld [vmem:[#allocation6 + $0x360] sm:$0xff] }
 0x158   :  { %2618 = vmatpush1.bf16.msra.mxu1 %v2617_v62  ;;  %2492 = vmatprep.subr.bf16.mxu0 %v2491_v63  ;;  %v1267_v62 = vld [vmem:[#allocation6 + $0x350] sm:$0xff]  ;;  %v2639_v63 = vpack.c.bf16 %v1272_v56, %v1268_v55  ;;  %v2513_v5 = vpack.c.bf16 %v1269_v61, %v1265_v60  ;;  %v1297_v60 = vld [vmem:[#allocation6 + $0x440] sm:$0xff] }
 0x159   :  { %2620 = vmatprep.subr.bf16.mxu1 %v2619_v3  ;;  %v1276_v3 = vld [vmem:[#allocation6 + $0x398] sm:$0xff]  ;;  %v2641_v6 = vpack.c.bf16 %v1271_v0, %v1267_v62 }
 0x15b   :  { %2494 = vmatpush1.bf16.msra.mxu0 %v2493_v9  ;;  %v1277_v9 = vld [vmem:[#allocation6 + $0x3a0] sm:$0xff] }
 0x15c   :  { %2622 = vmatpush1.bf16.msra.mxu1 %v2621_v10  ;;  %2496 = vmatprep.subr.bf16.mxu0 %v2495_v11  ;;  %v2643_v10 = vpack.c.bf16 %v1280_v4, %v1276_v3  ;;  %v1275_v11 = vld [vmem:[#allocation6 + $0x390] sm:$0xff]  ;;  %v2517_v13 = vpack.c.bf16 %v1277_v9, %v1273_v8  ;;  %v1301_v3 = vld [vmem:[#allocation6 + $0x460] sm:$0xff]  ;;  %v1306_v8 = vld [vmem:[#allocation6 + $0x488] sm:$0xff] }
 0x15d   :  { %2624 = vmatprep.subr.bf16.mxu1 %v2623_v15  ;;  %v2645_v14 = vpack.c.bf16 %v1279_v12, %v1275_v11  ;;  %v1282_v15 = vld [vmem:[#allocation6 + $0x3c8] sm:$0xff]  ;;  %v1299_v4 = vld [vmem:[#allocation6 + $0x450] sm:$0xff]  ;;  %v1308_v11 = vld [vmem:[#allocation6 + $0x498] sm:$0xff] }
 0x15e   :  { %v2519_v18 = vpack.c.bf16 %v1286_v16, %v1282_v15  ;;  %v1312_v12 = vld [vmem:[#allocation6 + $0x4b8] sm:$0xff]  ;;  %v1305_v16 = vld [vmem:[#allocation6 + $0x480] sm:$0xff] }
 0x15f   :  { %2498 = vmatpush1.bf16.msra.mxu0 %v2497_v21  ;;  %v1285_v21 = vld [vmem:[#allocation6 + $0x3e0] sm:$0xff] }
 0x160   :  { %2626 = vmatpush1.bf16.msra.mxu1 %v2625_v22  ;;  %2500 = vmatprep.subr.bf16.mxu0 %v2499_v23  ;;  %v2647_v22 = vpack.c.bf16 %v1288_v19, %v1284_v17  ;;  %v2521_v23 = vpack.c.bf16 %v1285_v21, %v1281_v20  ;;  %v1309_v17 = vld [vmem:[#allocation6 + $0x4a0] sm:$0xff]  ;;  %v1307_v19 = vld [vmem:[#allocation6 + $0x490] sm:$0xff]  ;;  %v1314_v21 = vld [vmem:[#allocation6 + $0x4c8] sm:$0xff] }
 0x161   :  { %2628 = vmatprep.subr.bf16.mxu1 %v2627_v27  ;;  %v1290_v27 = vld [vmem:[#allocation6 + $0x408] sm:$0xff]  ;;  %v1311_v20 = vld [vmem:[#allocation6 + $0x4b0] sm:$0xff] }
 0x162   :  { %v2523_v30 = vpack.c.bf16 %v1294_v28, %v1290_v27  ;;  %v2533_v28 = vpack.c.bf16 %v1309_v17, %v1305_v16  ;;  %v2661_v29 = vpack.c.bf16 %v1311_v20, %v1307_v19  ;;  %v1343_v16 = vld [vmem:[#allocation6 + $0x5b0] sm:$0xff]  ;;  %v1346_v17 = vld [vmem:[#allocation6 + $0x5c8] sm:$0xff]  ;;  %v1348_v19 = vld [vmem:[#allocation6 + $0x5d8] sm:$0xff] }
 0x163   :  { %2502 = vmatpush1.bf16.msra.mxu0 %v2501_v33  ;;  %v510_v33 = vlaneseq  ;;  %v1352_v20 = vld [vmem:[#allocation6 + $0x5f8] sm:$0xff] }
 0x164   :  { %2630 = vmatpush1.bf16.msra.mxu1 %v2629_v34  ;;  %2504 = vmatprep.subr.bf16.mxu0 %v2503_v35 }
 0x165   :  { %2632 = vmatprep.subr.bf16.mxu1 %v2631_v39  ;;  %v3147_v34 = vshrl.u32 %v510_v33, 7 }
 0x167   :  { %2506 = vmatpush1.bf16.msra.mxu0 %v2505_v45  ;;  %v512_v35 = vsub.s32 0, %v3147_v34  ;;  %v516_v37 = vsub.s32 1, %v3147_v34  ;;  %v524_v40 = vsub.s32 3, %v3147_v34 }
 0x168   :  { %2634 = vmatpush1.bf16.msra.mxu1 %v2633_v46  ;;  %2508 = vmatprep.subr.bf16.mxu0 %v2507_v47  ;;  %v1291_v47 = vld [vmem:[#allocation6 + $0x410] sm:$0xff] }
 0x169   :  { %2636 = vmatprep.subr.bf16.mxu1 %v2635_v51  ;;  %v513_v38 = vrot.slane %v3150_v36, %v512_v35  ;;  %v517_v39 = vrot.slane %v3150_v36, %v516_v37  ;;  %v3165_v55 = vrot.slane %v3150_v36, %v524_v40 }
 0x16b   :  { %2510 = vmatpush1.bf16.msra.mxu0 %v2509_v57 }
 0x16c   :  { %2638 = vmatpush1.bf16.msra.mxu1 %v2637_v58  ;;  %2512 = vmatprep.subr.bf16.mxu0 %v2511_v59  ;;  %v2525_v58 = vpack.c.bf16 %v1293_v43, %v1289_v42  ;;  %v2653_v59 = vpack.c.bf16 %v1295_v48, %v1291_v47  ;;  %v1326_v42 = vld [vmem:[#allocation6 + $0x528] sm:$0xff]  ;;  %v1324_v43 = vld [vmem:[#allocation6 + $0x518] sm:$0xff]  ;;  %v1321_v48 = vld [vmem:[#allocation6 + $0x500] sm:$0xff] }
 0x16d   :  { %2640 = vmatprep.subr.bf16.mxu1 %v2639_v63 }
 0x16f   :  { %2514 = vmatpush1.bf16.msra.mxu0 %v2513_v5  ;;  %v1303_v5 = vld [vmem:[#allocation6 + $0x470] sm:$0xff] }
 0x170   :  { %2642 = vmatpush1.bf16.msra.mxu1 %v2641_v6  ;;  %2516 = vmatprep.subr.bf16.mxu0 %v2515_v7  ;;  %v2657_v15 = vpack.c.bf16 %v1303_v5, %v1299_v4  ;;  %v1338_v4 = vld [vmem:[#allocation6 + $0x588] sm:$0xff] }
 0x171   :  { %2644 = vmatprep.subr.bf16.mxu1 %v2643_v10  ;;  %v1310_v10 = vld [vmem:[#allocation6 + $0x4a8] sm:$0xff] }
 0x172   :  { %v1342_v5 = vld [vmem:[#allocation6 + $0x5a8] sm:$0xff] }
 0x173   :  { %2518 = vmatpush1.bf16.msra.mxu0 %v2517_v13 }
 0x174   :  { %2646 = vmatpush1.bf16.msra.mxu1 %v2645_v14  ;;  %2520 = vmatprep.subr.bf16.mxu0 %v2519_v18  ;;  %v2529_v14 = vpack.c.bf16 %v1301_v3, %v1297_v60  ;;  %v2669_v60 = vpack.c.bf16 %v1327_v53, %v1323_v52  ;;  %v1335_v3 = vld [vmem:[#allocation6 + $0x570] sm:$0xff]  ;;  %v1361_v53 = vld [vmem:[#allocation6 + $0x640] sm:$0xff] }
 0x175   :  { %2648 = vmatprep.subr.bf16.mxu1 %v2647_v22  ;;  %v2531_v22 = vpack.c.bf16 %v1310_v10, %v1306_v8  ;;  %v1344_v8 = vld [vmem:[#allocation6 + $0x5b8] sm:$0xff] }
 0x177   :  { %2522 = vmatpush1.bf16.msra.mxu0 %v2521_v23  ;;  %v2659_v23 = vpack.c.bf16 %v1312_v12, %v1308_v11  ;;  %v1337_v11 = vld [vmem:[#allocation6 + $0x580] sm:$0xff] }
 0x178   :  { %2650 = vmatpush1.bf16.msra.mxu1 %v2649_v26  ;;  %2524 = vmatprep.subr.bf16.mxu0 %v2523_v30  ;;  %v1320_v26 = vld [vmem:[#allocation6 + $0x4f8] sm:$0xff]  ;;  %v1313_v30 = vld [vmem:[#allocation6 + $0x4c0] sm:$0xff] }
 0x179   :  { %2652 = vmatprep.subr.bf16.mxu1 %v2651_v32  ;;  %v2535_v32 = vpack.c.bf16 %v1318_v24, %v1314_v21  ;;  %v2663_v33 = vpack.c.bf16 %v1320_v26, %v1316_v25  ;;  %v1341_v12 = vld [vmem:[#allocation6 + $0x5a0] sm:$0xff]  ;;  %v2679_v26 = vpack.c.bf16 %v1352_v20, %v1348_v19  ;;  %v1379_v20 = vld [vmem:[#allocation6 + $0x6d0] sm:$0xff] }
 0x17a   :  { %v2549_v21 = vpack.c.bf16 %v1341_v12, %v1337_v11  ;;  %v1349_v24 = vld [vmem:[#allocation6 + $0x5e0] sm:$0xff]  ;;  %v1382_v11 = vld [vmem:[#allocation6 + $0x6e8] sm:$0xff]  ;;  %v1380_v12 = vld [vmem:[#allocation6 + $0x6d8] sm:$0xff] }
 0x20c   :  { %v834_v41 = vpop.f32.mrb[0].mxu0 }
 0x20d   :  { %v2779_v44 = vadd.f32 %v834_v41, %v513_v38  ;;  %v3160_v45 = vpop.f32.mrb[0].mxu1  ;;  %v836_v46 = vpop.f32.mrb[1].mxu0  ;;  %v1322_v41 = vld [vmem:[#allocation6 + $0x508] sm:$0xff] }
 0x20e   :  { %v2780_v50 = vadd.f32 %v836_v46, %v517_v39  ;;  %v1144_v51 = vpop.f32.mrb[1].mxu1  ;;  %v2537_v46 = vpack.c.bf16 %v1317_v31, %v1313_v30  ;;  %v1358_v30 = vld [vmem:[#allocation6 + $0x628] sm:$0xff]  ;;  %v1356_v31 = vld [vmem:[#allocation6 + $0x618] sm:$0xff] }
 0x20f   :  { %v1153_v61 = vmax.f32 %v2779_v44, 0.0  ;;  %v2784_v9 = vadd.f32 %v1144_v51, %v3165_v55  ;;  %v1328_v44 = vld [vmem:[#allocation6 + $0x538] sm:$0xff] }
 0x210   :  { %v1154_v56 = vmax.f32 %v2780_v50, 0.0  ;;  %v840_v57 = vpop.f32.mrb[2].mxu0  ;;  %v2539_v50 = vpack.c.bf16 %v1326_v42, %v1322_v41  ;;  %v2667_v51 = vpack.c.bf16 %v1328_v44, %v1324_v43  ;;  %v1357_v41 = vld [vmem:[#allocation6 + $0x620] sm:$0xff]  ;;  %v1355_v44 = vld [vmem:[#allocation6 + $0x610] sm:$0xff] }
 0x211   :  { %v2781_v62 = vadd.f32 %v840_v57, %v513_v38  ;;  %v3167_v63 = vpop.f32.mrb[2].mxu1  ;;  %v842_v0 = vpop.f32.mrb[3].mxu0  ;;  %v1156_v27 = vmax.f32 %v2784_v9, 0.0  ;;  %v1315_v38 = vld [vmem:[#allocation6 + $0x4d0] sm:$0xff]  ;;  %v1332_v57 = vld [vmem:[#allocation6 + $0x558] sm:$0xff] }
 0x212   :  { %v2782_v6 = vadd.f32 %v842_v0, %v517_v39  ;;  %v3169_v7 = vpop.f32.mrb[3].mxu1  ;;  %1503 = vmatprep.mubr.f32.mxu0 %v1154_v56  ;;  %1657 = vmatprep.mubr.f32.mxu1 %v1154_v56  ;;  %v1319_v39 = vld [vmem:[#allocation6 + $0x4f0] sm:$0xff]  ;;  %v1334_v56 = vld [vmem:[#allocation6 + $0x568] sm:$0xff] }
 0x213   :  { %1504 = vmatmul.mubr.f32.vlgmr.msra.gmra.mrb[4].mxu0 %v1153_v61  ;;  %1658 = vmatmul.mubr.f32.vlgmr.msra.gmra.mrb[4].mxu1 %v1153_v61  ;;  %v1157_v18 = vmax.f32 %v2781_v62, 0.0  ;;  %v2665_v47 = vpack.c.bf16 %v1319_v39, %v1315_v38  ;;  %v1329_v61 = vld [vmem:[#allocation6 + $0x540] sm:$0xff]  ;;  %v2543_v0 = vpack.c.bf16 %v1334_v56, %v1330_v54 }
 0x214   :  { %v1158_v13 = vmax.f32 %v2782_v6, 0.0  ;;  %2526 = vmatpush1.bf16.msra.mxu0 %v2525_v58  ;;  %2654 = vmatpush1.bf16.msra.mxu1 %v2653_v59  ;;  %v1336_v58 = vld [vmem:[#allocation6 + $0x578] sm:$0xff]  ;;  %v2541_v59 = vpack.c.bf16 %v1325_v49, %v1321_v48  ;;  %v1333_v62 = vld [vmem:[#allocation6 + $0x560] sm:$0xff]  ;;  %v1366_v48 = vld [vmem:[#allocation6 + $0x668] sm:$0xff] }
 0x215   :  { %2528 = vmatprep.subr.bf16.mxu0 %v2527_v1  ;;  %2656 = vmatprep.subr.bf16.mxu1 %v2655_v2  ;;  %v2671_v1 = vpack.c.bf16 %v1336_v58, %v1332_v57  ;;  %v1331_v2 = vld [vmem:[#allocation6 + $0x550] sm:$0xff]  ;;  %v1340_v6 = vld [vmem:[#allocation6 + $0x598] sm:$0xff]  ;;  %v2545_v9 = vpack.c.bf16 %v1333_v62, %v1329_v61  ;;  %v1353_v39 = vld [vmem:[#allocation6 + $0x600] sm:$0xff] }
 0x216   :  { %1509 = vmatprep.mubr.f32.mxu0 %v1158_v13  ;;  %1663 = vmatprep.mubr.f32.mxu1 %v1158_v13  ;;  %v2673_v10 = vpack.c.bf16 %v1335_v3, %v1331_v2  ;;  %v2547_v13 = vpack.c.bf16 %v1342_v5, %v1338_v4  ;;  %v1364_v49 = vld [vmem:[#allocation6 + $0x658] sm:$0xff]  ;;  %v1365_v54 = vld [vmem:[#allocation6 + $0x660] sm:$0xff]  ;;  %v1363_v58 = vld [vmem:[#allocation6 + $0x650] sm:$0xff] }
 0x217   :  { %1510 = vmatmul.mubr.f32.gmra.mrb[6].mxu0 %v1157_v18  ;;  %1664 = vmatmul.mubr.f32.gmra.mrb[6].mxu1 %v1157_v18  ;;  %v1350_v18 = vld [vmem:[#allocation6 + $0x5e8] sm:$0xff]  ;;  %v1372_v62 = vld [vmem:[#allocation6 + $0x698] sm:$0xff]  ;;  %v1369_v3 = vld [vmem:[#allocation6 + $0x680] sm:$0xff] }
 0x218   :  { %2530 = vmatpush1.bf16.msra.mxu0 %v2529_v14  ;;  %2658 = vmatpush1.bf16.msra.mxu1 %v2657_v15  ;;  %v2675_v14 = vpack.c.bf16 %v1344_v8, %v1340_v6  ;;  %v1339_v15 = vld [vmem:[#allocation6 + $0x590] sm:$0xff]  ;;  %v2551_v25 = vpack.c.bf16 %v1350_v18, %v1346_v17  ;;  %v1374_v61 = vld [vmem:[#allocation6 + $0x6a8] sm:$0xff]  ;;  %v1373_v4 = vld [vmem:[#allocation6 + $0x6a0] sm:$0xff] }
 0x219   :  { %1580 = vmatprep.mubr.f32.mxu0 %v1156_v27  ;;  %1734 = vmatprep.mubr.f32.mxu1 %v1156_v27  ;;  %v1347_v27 = vld [vmem:[#allocation6 + $0x5d0] sm:$0xff]  ;;  %v1381_v17 = vld [vmem:[#allocation6 + $0x6e0] sm:$0xff] }
 0x21a   :  { %2532 = vmatprep.subr.bf16.mxu0 %v2531_v22  ;;  %2660 = vmatprep.subr.bf16.mxu1 %v2659_v23  ;;  %v2677_v22 = vpack.c.bf16 %v1343_v16, %v1339_v15  ;;  %v1345_v23 = vld [vmem:[#allocation6 + $0x5c0] sm:$0xff]  ;;  %v1371_v8 = vld [vmem:[#allocation6 + $0x690] sm:$0xff] }
 0x21b   :  { %v1377_v16 = vld [vmem:[#allocation6 + $0x6c0] sm:$0xff] }
 0x21c   :  { %2534 = vmatpush1.bf16.msra.mxu0 %v2533_v28  ;;  %2662 = vmatpush1.bf16.msra.mxu1 %v2661_v29  ;;  %v1351_v28 = vld [vmem:[#allocation6 + $0x5f0] sm:$0xff]  ;;  %v1354_v29 = vld [vmem:[#allocation6 + $0x608] sm:$0xff] }
 0x21d   :  { %2536 = vmatprep.subr.bf16.mxu0 %v2535_v32  ;;  %2664 = vmatprep.subr.bf16.mxu1 %v2663_v33  ;;  %v1360_v32 = vld [vmem:[#allocation6 + $0x638] sm:$0xff]  ;;  %v2553_v33 = vpack.c.bf16 %v1349_v24, %v1345_v23  ;;  %v2681_v38 = vpack.c.bf16 %v1351_v28, %v1347_v27  ;;  %v2555_v42 = vpack.c.bf16 %v1358_v30, %v1354_v29  ;;  %v1390_v23 = vld [vmem:[#allocation6 + $0x728] sm:$0xff]  ;;  %v1385_v28 = vld [vmem:[#allocation6 + $0x700] sm:$0xff] }
 0x21e   :  { %v2683_v43 = vpack.c.bf16 %v1360_v32, %v1356_v31  ;;  %v1388_v24 = vld [vmem:[#allocation6 + $0x718] sm:$0xff]  ;;  %v1389_v29 = vld [vmem:[#allocation6 + $0x720] sm:$0xff]  ;;  %v1387_v32 = vld [vmem:[#allocation6 + $0x710] sm:$0xff] }
 0x220   :  { %2538 = vmatpush1.bf16.msra.mxu0 %v2537_v46  ;;  %2666 = vmatpush1.bf16.msra.mxu1 %v2665_v47  ;;  %v1359_v46 = vld [vmem:[#allocation6 + $0x630] sm:$0xff]  ;;  %v1362_v47 = vld [vmem:[#allocation6 + $0x648] sm:$0xff] }
 0x221   :  { %2540 = vmatprep.subr.bf16.mxu0 %v2539_v50  ;;  %2668 = vmatprep.subr.bf16.mxu1 %v2667_v51  ;;  %v1368_v50 = vld [vmem:[#allocation6 + $0x678] sm:$0xff]  ;;  %v2557_v51 = vpack.c.bf16 %v1357_v41, %v1353_v39  ;;  %v2685_v52 = vpack.c.bf16 %v1359_v46, %v1355_v44  ;;  %v2559_v56 = vpack.c.bf16 %v1366_v48, %v1362_v47  ;;  %v1398_v39 = vld [vmem:[#allocation6 + $0x768] sm:$0xff]  ;;  %v1393_v46 = vld [vmem:[#allocation6 + $0x740] sm:$0xff] }
 0x222   :  { %v2687_v57 = vpack.c.bf16 %v1368_v50, %v1364_v49  ;;  %v1396_v41 = vld [vmem:[#allocation6 + $0x758] sm:$0xff]  ;;  %v1397_v47 = vld [vmem:[#allocation6 + $0x760] sm:$0xff]  ;;  %v1395_v50 = vld [vmem:[#allocation6 + $0x750] sm:$0xff] }
 0x224   :  { %2542 = vmatpush1.bf16.msra.mxu0 %v2541_v59  ;;  %2670 = vmatpush1.bf16.msra.mxu1 %v2669_v60  ;;  %v1367_v59 = vld [vmem:[#allocation6 + $0x670] sm:$0xff]  ;;  %v1370_v60 = vld [vmem:[#allocation6 + $0x688] sm:$0xff] }
 0x225   :  { %2544 = vmatprep.subr.bf16.mxu0 %v2543_v0  ;;  %2672 = vmatprep.subr.bf16.mxu1 %v2671_v1  ;;  %v1376_v0 = vld [vmem:[#allocation6 + $0x6b8] sm:$0xff]  ;;  %v2561_v1 = vpack.c.bf16 %v1365_v54, %v1361_v53  ;;  %v2689_v2 = vpack.c.bf16 %v1367_v59, %v1363_v58  ;;  %v2563_v5 = vpack.c.bf16 %v1374_v61, %v1370_v60  ;;  %v1406_v53 = vld [vmem:[#allocation6 + $0x7a8] sm:$0xff]  ;;  %v1401_v59 = vld [vmem:[#allocation6 + $0x780] sm:$0xff]  ;;  %v520_v61 = vsub.s32 2, %v3147_v34 }
 0x226   :  { %v2691_v6 = vpack.c.bf16 %v1376_v0, %v1372_v62  ;;  %v1404_v54 = vld [vmem:[#allocation6 + $0x798] sm:$0xff]  ;;  %v1405_v60 = vld [vmem:[#allocation6 + $0x7a0] sm:$0xff] }
 0x228   :  { %2546 = vmatpush1.bf16.msra.mxu0 %v2545_v9  ;;  %2674 = vmatpush1.bf16.msra.mxu1 %v2673_v10  ;;  %v1375_v9 = vld [vmem:[#allocation6 + $0x6b0] sm:$0xff]  ;;  %v1378_v10 = vld [vmem:[#allocation6 + $0x6c8] sm:$0xff] }
 0x229   :  { %2548 = vmatprep.subr.bf16.mxu0 %v2547_v13  ;;  %2676 = vmatprep.subr.bf16.mxu1 %v2675_v14  ;;  %v1384_v13 = vld [vmem:[#allocation6 + $0x6f8] sm:$0xff]  ;;  %v2565_v14 = vpack.c.bf16 %v1373_v4, %v1369_v3  ;;  %v2693_v15 = vpack.c.bf16 %v1375_v9, %v1371_v8  ;;  %v2567_v18 = vpack.c.bf16 %v1382_v11, %v1378_v10  ;;  %v1410_v3 = vld [vmem:[#allocation6 + $0x7c8] sm:$0xff]  ;;  %v1409_v10 = vld [vmem:[#allocation6 + $0x7c0] sm:$0xff] }
 0x22a   :  { %v2695_v19 = vpack.c.bf16 %v1384_v13, %v1380_v12  ;;  %v1414_v4 = vld [vmem:[#allocation6 + $0x7e8] sm:$0xff]  ;;  %v2581_v8 = vpack.c.bf16 %v1405_v60, %v1401_v59  ;;  %v1413_v11 = vld [vmem:[#allocation6 + $0x7e0] sm:$0xff]  ;;  %v521_v12 = vrot.slane %v3150_v36, %v520_v61 }
 0x22b   :  { %v2583_v13 = vpack.c.bf16 %v1414_v4, %v1410_v3  ;;  %v1791_v59 = vld [vmem:[#allocation9 + $0x120] sm:$0xff]  ;;  %v1792_v60 = vld [vmem:[#allocation9 + $0x128] sm:$0xff] }
 0x22c   :  { %2550 = vmatpush1.bf16.msra.mxu0 %v2549_v21  ;;  %2678 = vmatpush1.bf16.msra.mxu1 %v2677_v22  ;;  %v1383_v21 = vld [vmem:[#allocation6 + $0x6f0] sm:$0xff]  ;;  %v1386_v22 = vld [vmem:[#allocation6 + $0x708] sm:$0xff]  ;;  %v2757_v4 = vpack.c.bf16 %v1792_v60, %v1791_v59 }
 0x22d   :  { %2552 = vmatprep.subr.bf16.mxu0 %v2551_v25  ;;  %2680 = vmatprep.subr.bf16.mxu1 %v2679_v26  ;;  %v1392_v25 = vld [vmem:[#allocation6 + $0x738] sm:$0xff]  ;;  %v2569_v26 = vpack.c.bf16 %v1381_v17, %v1377_v16  ;;  %v2697_v27 = vpack.c.bf16 %v1383_v21, %v1379_v20  ;;  %v2571_v30 = vpack.c.bf16 %v1390_v23, %v1386_v22  ;;  %v1415_v16 = vld [vmem:[#allocation6 + $0x7f0] sm:$0xff]  ;;  %v1771_v17 = vld [vmem:[#allocation9 + $0x80] sm:$0xff] }
 0x22e   :  { %v2699_v31 = vpack.c.bf16 %v1392_v25, %v1388_v24  ;;  %v1804_v20 = vld [vmem:[#allocation9 + $0x188] sm:$0xff]  ;;  %v2585_v21 = vpack.c.bf16 %v1413_v11, %v1409_v10  ;;  %v2783_v23 = vadd.f32 %v3160_v45, %v521_v12  ;;  %v1755_v25 = vld [vmem:[#allocation9] sm:$0xff]  ;;  %v2785_v45 = vadd.f32 %v3167_v63, %v521_v12  ;;  %v1793_v10 = vld [vmem:[#allocation9 + $0x130] sm:$0xff] }
 0x22f   :  { %v1794_v11 = vld [vmem:[#allocation9 + $0x138] sm:$0xff]  ;;  %v1779_v12 = vld [vmem:[#allocation9 + $0xc0] sm:$0xff] }
 0x230   :  { %2554 = vmatpush1.bf16.msra.mxu0 %v2553_v33  ;;  %2682 = vmatpush1.bf16.msra.mxu1 %v2681_v38  ;;  %v1391_v33 = vld [vmem:[#allocation6 + $0x730] sm:$0xff]  ;;  %v1394_v38 = vld [vmem:[#allocation6 + $0x748] sm:$0xff]  ;;  %v1159_v63 = vmax.f32 %v2785_v45, 0.0 }
 0x231   :  { %2556 = vmatprep.subr.bf16.mxu0 %v2555_v42  ;;  %2684 = vmatprep.subr.bf16.mxu1 %v2683_v43  ;;  %v1400_v42 = vld [vmem:[#allocation6 + $0x778] sm:$0xff]  ;;  %v2573_v43 = vpack.c.bf16 %v1389_v29, %v1385_v28  ;;  %v2701_v44 = vpack.c.bf16 %v1391_v33, %v1387_v32  ;;  %v2575_v48 = vpack.c.bf16 %v1398_v39, %v1394_v38  ;;  %v1787_v28 = vld [vmem:[#allocation9 + $0x100] sm:$0xff]  ;;  %v1788_v29 = vld [vmem:[#allocation9 + $0x108] sm:$0xff]  ;;  %v1155_v38 = vmax.f32 %v2783_v23, 0.0 }
 0x232   :  { %v2703_v49 = vpack.c.bf16 %v1400_v42, %v1396_v41  ;;  %v1805_v32 = vld [vmem:[#allocation9 + $0x190] sm:$0xff]  ;;  %v1806_v33 = vld [vmem:[#allocation9 + $0x198] sm:$0xff]  ;;  %v2749_v41 = vpack.c.bf16 %v1788_v29, %v1787_v28  ;;  %v1796_v23 = vld [vmem:[#allocation9 + $0x148] sm:$0xff] }
 0x233   :  { %v1757_v42 = vld [vmem:[#allocation9 + $0x10] sm:$0xff]  ;;  %v1783_v45 = vld [vmem:[#allocation9 + $0xe0] sm:$0xff] }
 0x234   :  { %2558 = vmatpush1.bf16.msra.mxu0 %v2557_v51  ;;  %2686 = vmatpush1.bf16.msra.mxu1 %v2685_v52  ;;  %v1399_v51 = vld [vmem:[#allocation6 + $0x770] sm:$0xff]  ;;  %v1402_v52 = vld [vmem:[#allocation6 + $0x788] sm:$0xff] }
 0x235   :  { %2560 = vmatprep.subr.bf16.mxu0 %v2559_v56  ;;  %2688 = vmatprep.subr.bf16.mxu1 %v2687_v57  ;;  %v1408_v56 = vld [vmem:[#allocation6 + $0x7b8] sm:$0xff]  ;;  %v2577_v57 = vpack.c.bf16 %v1397_v47, %v1393_v46  ;;  %v2705_v58 = vpack.c.bf16 %v1399_v51, %v1395_v50  ;;  %v2579_v62 = vpack.c.bf16 %v1406_v53, %v1402_v52  ;;  %v1807_v50 = vld [vmem:[#allocation9 + $0x1a0] sm:$0xff]  ;;  %v1808_v51 = vld [vmem:[#allocation9 + $0x1a8] sm:$0xff] }
 0x236   :  { %v2707_v0 = vpack.c.bf16 %v1408_v56, %v1404_v54  ;;  %v1790_v47 = vld [vmem:[#allocation9 + $0x118] sm:$0xff]  ;;  %v1759_v54 = vld [vmem:[#allocation9 + $0x20] sm:$0xff]  ;;  %v1760_v56 = vld [vmem:[#allocation9 + $0x28] sm:$0xff] }
 0x237   :  { %v2725_v3 = vpack.c.bf16 %v1760_v56, %v1759_v54  ;;  %v1765_v29 = vld [vmem:[#allocation9 + $0x50] sm:$0xff]  ;;  %v1818_v56 = vld [vmem:[#allocation9 + $0x1f8] sm:$0xff] }
 0x238   :  { %2562 = vmatpush1.bf16.msra.mxu0 %v2561_v1  ;;  %2690 = vmatpush1.bf16.msra.mxu1 %v2689_v2  ;;  %v1403_v1 = vld [vmem:[#allocation6 + $0x790] sm:$0xff] }
 0x239   :  { %2564 = vmatprep.subr.bf16.mxu0 %v2563_v5  ;;  %2692 = vmatprep.subr.bf16.mxu1 %v2691_v6  ;;  %v1407_v2 = vld [vmem:[#allocation6 + $0x7b0] sm:$0xff]  ;;  %v1412_v5 = vld [vmem:[#allocation6 + $0x7d8] sm:$0xff] }
 0x23a   :  { %v1416_v6 = vld [vmem:[#allocation6 + $0x7f8] sm:$0xff]  ;;  %v2709_v9 = vpack.c.bf16 %v1407_v2, %v1403_v1 }
 0x23b   :  { %v1809_v1 = vld [vmem:[#allocation9 + $0x1b0] sm:$0xff]  ;;  %v1810_v2 = vld [vmem:[#allocation9 + $0x1b8] sm:$0xff] }
 0x23c   :  { %2566 = vmatpush1.bf16.msra.mxu0 %v2565_v14  ;;  %2694 = vmatpush1.bf16.msra.mxu1 %v2693_v15  ;;  %v2711_v14 = vpack.c.bf16 %v1416_v6, %v1412_v5  ;;  %v1411_v15 = vld [vmem:[#allocation6 + $0x7d0] sm:$0xff]  ;;  %v1762_v6 = vld [vmem:[#allocation9 + $0x38] sm:$0xff] }
 0x23d   :  { %2568 = vmatprep.subr.bf16.mxu0 %v2567_v18  ;;  %2696 = vmatprep.subr.bf16.mxu1 %v2695_v19  ;;  %v1772_v18 = vld [vmem:[#allocation9 + $0x88] sm:$0xff]  ;;  %v1803_v19 = vld [vmem:[#allocation9 + $0x180] sm:$0xff]  ;;  %v2713_v22 = vpack.c.bf16 %v1415_v16, %v1411_v15  ;;  %v1761_v5 = vld [vmem:[#allocation9 + $0x30] sm:$0xff] }
 0x23e   :  { %v2715_v24 = vpack.c.bf16 %v1772_v18, %v1771_v17  ;;  %v2747_v36 = vpack.c.bf16 %v1804_v20, %v1803_v19  ;;  %v1812_v15 = vld [vmem:[#allocation9 + $0x1c8] sm:$0xff]  ;;  %v2729_v16 = vpack.c.bf16 %v1762_v6, %v1761_v5  ;;  %v2761_v17 = vpack.c.bf16 %v1794_v11, %v1793_v10  ;;  %v1763_v18 = vld [vmem:[#allocation9 + $0x40] sm:$0xff] }
 0x23f   :  { %v1764_v19 = vld [vmem:[#allocation9 + $0x48] sm:$0xff] }
 0x240   :  { %2570 = vmatpush1.bf16.msra.mxu0 %v2569_v26  ;;  %2698 = vmatpush1.bf16.msra.mxu1 %v2697_v27  ;;  %v1756_v26 = vld [vmem:[#allocation9 + $0x8] sm:$0xff]  ;;  %v2786_v27 = vadd.f32 %v3169_v7, %v3165_v55  ;;  %v2751_v55 = vpack.c.bf16 %v1806_v33, %v1805_v32  ;;  %v1789_v7 = vld [vmem:[#allocation9 + $0x110] sm:$0xff] }
 0x241   :  { %2572 = vmatprep.subr.bf16.mxu0 %v2571_v30  ;;  %2700 = vmatprep.subr.bf16.mxu1 %v2699_v31  ;;  %v1773_v30 = vld [vmem:[#allocation9 + $0x90] sm:$0xff]  ;;  %v1774_v31 = vld [vmem:[#allocation9 + $0x98] sm:$0xff]  ;;  %v2717_v39 = vpack.c.bf16 %v1756_v26, %v1755_v25  ;;  %v2753_v53 = vpack.c.bf16 %v1790_v47, %v1789_v7  ;;  %v1767_v7 = vld [vmem:[#allocation9 + $0x60] sm:$0xff] }
 0x242   :  { %v2719_v46 = vpack.c.bf16 %v1774_v31, %v1773_v30  ;;  %v1813_v25 = vld [vmem:[#allocation9 + $0x1d0] sm:$0xff]  ;;  %v1814_v26 = vld [vmem:[#allocation9 + $0x1d8] sm:$0xff]  ;;  %v1768_v47 = vld [vmem:[#allocation9 + $0x68] sm:$0xff] }
 0x243   :  { %v1766_v30 = vld [vmem:[#allocation9 + $0x58] sm:$0xff]  ;;  %v2767_v32 = vpack.c.bf16 %v1814_v26, %v1813_v25  ;;  %v1797_v33 = vld [vmem:[#allocation9 + $0x150] sm:$0xff] }
 0x244   :  { %2574 = vmatpush1.bf16.msra.mxu0 %v2573_v43  ;;  %2702 = vmatpush1.bf16.msra.mxu1 %v2701_v44  ;;  %v1758_v43 = vld [vmem:[#allocation9 + $0x18] sm:$0xff]  ;;  %v1160_v44 = vmax.f32 %v2786_v27, 0.0  ;;  %v2733_v27 = vpack.c.bf16 %v1764_v19, %v1763_v18 }
 0x245   :  { %2576 = vmatprep.subr.bf16.mxu0 %v2575_v48  ;;  %2704 = vmatprep.subr.bf16.mxu1 %v2703_v49  ;;  %v1775_v48 = vld [vmem:[#allocation9 + $0xa0] sm:$0xff]  ;;  %v1776_v49 = vld [vmem:[#allocation9 + $0xa8] sm:$0xff]  ;;  %v2721_v52 = vpack.c.bf16 %v1758_v43, %v1757_v42  ;;  %v2737_v43 = vpack.c.bf16 %v1766_v30, %v1765_v29 }
 0x246   :  { %v1816_v42 = vld [vmem:[#allocation9 + $0x1e8] sm:$0xff] }
 0x248   :  { %2578 = vmatpush1.bf16.msra.mxu0 %v2577_v57  ;;  %2706 = vmatpush1.bf16.msra.mxu1 %v2705_v58  ;;  %v2723_v57 = vpack.c.bf16 %v1776_v49, %v1775_v48  ;;  %v2755_v58 = vpack.c.bf16 %v1808_v51, %v1807_v50  ;;  %v1799_v48 = vld [vmem:[#allocation9 + $0x160] sm:$0xff]  ;;  %v2741_v49 = vpack.c.bf16 %v1768_v47, %v1767_v7  ;;  %v1800_v50 = vld [vmem:[#allocation9 + $0x168] sm:$0xff] }
 0x249   :  { %2580 = vmatprep.subr.bf16.mxu0 %v2579_v62  ;;  %2708 = vmatprep.subr.bf16.mxu1 %v2707_v0  ;;  %v1777_v62 = vld [vmem:[#allocation9 + $0xb0] sm:$0xff]  ;;  %v1778_v0 = vld [vmem:[#allocation9 + $0xb8] sm:$0xff]  ;;  %v2773_v51 = vpack.c.bf16 %v1800_v50, %v1799_v48 }
 0x24c   :  { %2582 = vmatpush1.bf16.msra.mxu0 %v2581_v8  ;;  %2710 = vmatpush1.bf16.msra.mxu1 %v2709_v9  ;;  %v2727_v8 = vpack.c.bf16 %v1778_v0, %v1777_v62  ;;  %v2759_v9 = vpack.c.bf16 %v1810_v2, %v1809_v1  ;;  %v1801_v62 = vld [vmem:[#allocation9 + $0x170] sm:$0xff]  ;;  %v1802_v0 = vld [vmem:[#allocation9 + $0x178] sm:$0xff] }
 0x24d   :  { %2584 = vmatprep.subr.bf16.mxu0 %v2583_v13  ;;  %2712 = vmatprep.subr.bf16.mxu1 %v2711_v14  ;;  %v1780_v13 = vld [vmem:[#allocation9 + $0xc8] sm:$0xff]  ;;  %v1811_v14 = vld [vmem:[#allocation9 + $0x1c0] sm:$0xff]  ;;  %v2777_v1 = vpack.c.bf16 %v1802_v0, %v1801_v62  ;;  %v1417_v2 = vld [vmem:[#allocation7] sm:$0xf] }
 0x24e   :  { %v2731_v20 = vpack.c.bf16 %v1780_v13, %v1779_v12  ;;  %v1426_v5 = vrot.slane %v1417_v2, %v516_v37  ;;  %v1434_v6 = vrot.slane %v1417_v2, %v524_v40 }
 0x250   :  { %2586 = vmatpush1.bf16.msra.mxu0 %v2585_v21  ;;  %2714 = vmatpush1.bf16.msra.mxu1 %v2713_v22  ;;  %v2763_v21 = vpack.c.bf16 %v1812_v15, %v1811_v14  ;;  %v1795_v22 = vld [vmem:[#allocation9 + $0x140] sm:$0xff] }
 0x251   :  { %2716 = vmatprep.subr.bf16.mxu0 %v2715_v24  ;;  %2748 = vmatprep.subr.bf16.mxu1 %v2747_v36  ;;  %v1781_v24 = vld [vmem:[#allocation9 + $0xd0] sm:$0xff]  ;;  %v1782_v36 = vld [vmem:[#allocation9 + $0xd8] sm:$0xff]  ;;  %v2765_v28 = vpack.c.bf16 %v1796_v23, %v1795_v22 }
 0x252   :  { %v2735_v31 = vpack.c.bf16 %v1782_v36, %v1781_v24 }
 0x253   :  { %1581 = vmatmul.mubr.f32.vlgmr.msra.gmra.mrb[4].mxu0 %v1155_v38  ;;  %1735 = vmatmul.mubr.f32.vlgmr.msra.gmra.mrb[4].mxu1 %v1155_v38  ;;  %v1798_v38 = vld [vmem:[#allocation9 + $0x158] sm:$0xff] }
 0x254   :  { %1586 = vmatprep.mubr.f32.mxu0 %v1160_v44  ;;  %1740 = vmatprep.mubr.f32.mxu1 %v1160_v44  ;;  %v2769_v44 = vpack.c.bf16 %v1798_v38, %v1797_v33 }
 0x255   :  { %2718 = vmatpush3.bf16.msra.mxu0 %v2717_v39  ;;  %2750 = vmatpush3.bf16.msra.mxu1 %v2749_v41  ;;  %v1784_v39 = vld [vmem:[#allocation9 + $0xe8] sm:$0xff]  ;;  %v1815_v41 = vld [vmem:[#allocation9 + $0x1e0] sm:$0xff] }
 0x256   :  { %2720 = vmatprep.subr.bf16.mxu0 %v2719_v46  ;;  %2752 = vmatprep.subr.bf16.mxu1 %v2751_v55  ;;  %v2739_v46 = vpack.c.bf16 %v1784_v39, %v1783_v45  ;;  %v2771_v55 = vpack.c.bf16 %v1816_v42, %v1815_v41 }
 0x257   :  { %1587 = vmatmul.mubr.f32.gmra.mrb[6].mxu0 %v1159_v63  ;;  %1741 = vmatmul.mubr.f32.gmra.mrb[6].mxu1 %v1159_v63  ;;  %v1785_v63 = vld [vmem:[#allocation9 + $0xf0] sm:$0xff] }
 0x259   :  { %2722 = vmatpush3.bf16.msra.mxu0 %v2721_v52  ;;  %2754 = vmatpush3.bf16.msra.mxu1 %v2753_v53  ;;  %v1786_v52 = vld [vmem:[#allocation9 + $0xf8] sm:$0xff]  ;;  %v1817_v53 = vld [vmem:[#allocation9 + $0x1f0] sm:$0xff] }
 0x25a   :  { %2724 = vmatprep.subr.bf16.mxu0 %v2723_v57  ;;  %2756 = vmatprep.subr.bf16.mxu1 %v2755_v58  ;;  %v2743_v54 = vpack.c.bf16 %v1786_v52, %v1785_v63  ;;  %v1769_v57 = vld [vmem:[#allocation9 + $0x70] sm:$0xff]  ;;  %v1770_v58 = vld [vmem:[#allocation9 + $0x78] sm:$0xff]  ;;  %v2775_v59 = vpack.c.bf16 %v1818_v56, %v1817_v53 }
 0x25b   :  { %v2745_v60 = vpack.c.bf16 %v1770_v58, %v1769_v57 }
 0x25d   :  { %2726 = vmatpush3.bf16.msra.mxu0 %v2725_v3  ;;  %2758 = vmatpush3.bf16.msra.mxu1 %v2757_v4  ;;  %v1422_v3 = vrot.slane %v1417_v2, %v512_v35  ;;  %v1430_v4 = vrot.slane %v1417_v2, %v520_v61 }
 0x25e   :  { %2728 = vmatprep.subr.bf16.mxu0 %v2727_v8  ;;  %2760 = vmatprep.subr.bf16.mxu1 %v2759_v9 }
 0x261   :  { %2730 = vmatpush3.bf16.msra.mxu0 %v2729_v16  ;;  %2762 = vmatpush3.bf16.msra.mxu1 %v2761_v17 }
 0x262   :  { %2732 = vmatprep.subr.bf16.mxu0 %v2731_v20  ;;  %2764 = vmatprep.subr.bf16.mxu1 %v2763_v21 }
 0x265   :  { %2734 = vmatpush3.bf16.msra.mxu0 %v2733_v27  ;;  %2766 = vmatpush3.bf16.msra.mxu1 %v2765_v28  ;;  %v1990_v28 = vld [vmem:[#allocation10] ss:$0 sm:$0xff] }
 0x266   :  { %2736 = vmatprep.subr.bf16.mxu0 %v2735_v31  ;;  %2768 = vmatprep.subr.bf16.mxu1 %v2767_v32 }
 0x269   :  { %2738 = vmatpush3.bf16.msra.mxu0 %v2737_v43  ;;  %2770 = vmatpush3.bf16.msra.mxu1 %v2769_v44 }
 0x26a   :  { %2740 = vmatprep.subr.bf16.mxu0 %v2739_v46  ;;  %2772 = vmatprep.subr.bf16.mxu1 %v2771_v55 }
 0x26d   :  { %2742 = vmatpush3.bf16.msra.mxu0 %v2741_v49  ;;  %2774 = vmatpush3.bf16.msra.mxu1 %v2773_v51 }
 0x26e   :  { %2744 = vmatprep.subr.bf16.mxu0 %v2743_v54  ;;  %2776 = vmatprep.subr.bf16.mxu1 %v2775_v59 }
 0x271   :  { %2746 = vmatpush3.bf16.msra.mxu0 %v2745_v60  ;;  %2778 = vmatpush3.bf16.msra.mxu1 %v2777_v1 }
 0x326   :  { %v1582_v8 = vpop.f32.mrb[4].mxu0  ;;  %v1736_v9 = vpop.f32.mrb[4].mxu1 }
 0x327   :  { %v2787_v10 = vadd.f32 %v1582_v8, %v1422_v3  ;;  %v2791_v11 = vadd.f32 %v1736_v9, %v1430_v4  ;;  %v1584_v12 = vpop.f32.mrb[5].mxu0  ;;  %v1738_v13 = vpop.f32.mrb[5].mxu1 }
 0x328   :  { %v2788_v14 = vadd.f32 %v1584_v12, %v1426_v5  ;;  %v2792_v15 = vadd.f32 %v1738_v13, %v1434_v6 }
 0x329   :  { %v1747_v19 = vmax.f32 %v2787_v10, 0.0  ;;  %v1749_v61 = vmax.f32 %v2791_v11, 0.0 }
 0x32a   :  { %v1748_v16 = vmax.f32 %v2788_v14, 0.0  ;;  %v1750_v17 = vmax.f32 %v2792_v15, 0.0  ;;  %v1588_v35 = vpop.f32.mrb[6].mxu0  ;;  %v1742_v18 = vpop.f32.mrb[6].mxu1 }
 0x32b   :  { %v2789_v20 = vadd.f32 %v1588_v35, %v1422_v3  ;;  %v2793_v21 = vadd.f32 %v1742_v18, %v1430_v4  ;;  %v1590_v37 = vpop.f32.mrb[7].mxu0  ;;  %v1744_v22 = vpop.f32.mrb[7].mxu1 }
 0x32c   :  { %v2790_v34 = vadd.f32 %v1590_v37, %v1426_v5  ;;  %v2794_v40 = vadd.f32 %v1744_v22, %v1434_v6  ;;  %1890 = vmatprep.mubr.f32.mxu0 %v1748_v16  ;;  %1965 = vmatprep.mubr.f32.mxu1 %v1750_v17 }
 0x32d   :  { %1891 = vmatmul.mubr.f32.vlgmr.msra.gmra.mrb[8].mxu0 %v1747_v19  ;;  %1966 = vmatmul.mubr.f32.vlgmr.msra.gmra.mrb[8].mxu1 %v1749_v61  ;;  %v1751_v36 = vmax.f32 %v2789_v20, 0.0  ;;  %v1753_v25 = vmax.f32 %v2793_v21, 0.0 }
 0x32e   :  { %v1752_v23 = vmax.f32 %v2790_v34, 0.0  ;;  %v1754_v24 = vmax.f32 %v2794_v40, 0.0 }
 0x330   :  { %1895 = vmatprep.mubr.f32.mxu0 %v1752_v23  ;;  %1970 = vmatprep.mubr.f32.mxu1 %v1754_v24 }
 0x331   :  { %1896 = vmatmul.mubr.f32.gmra.mrb[10].mxu0 %v1751_v36  ;;  %1971 = vmatmul.mubr.f32.gmra.mrb[10].mxu1 %v1753_v25 }
 0x400   :  { %v2023_v26 = vpop.f32.mrb[8].mxu0  ;;  %v2061_v27 = vpop.f32.mrb[8].mxu1 }
 0x401   :  { %v2024_v29 = vpop.f32.mrb[9].mxu0  ;;  %v2062_v30 = vpop.f32.mrb[9].mxu1 }
 0x402   :  { %v2025_v31 = vadd.f32 %v2024_v29, %v2023_v26  ;;  %v2063_v32 = vadd.f32 %v2062_v30, %v2061_v27 }
 0x404   :  { %v1893_v33 = vadd.f32 %v2025_v31, %v1990_v28  ;;  %v2026_v38 = vpop.f32.mrb[10].mxu0  ;;  %v2064_v45 = vpop.f32.mrb[10].mxu1 }
 0x405   :  { %v2027_v39 = vpop.f32.mrb[11].mxu0  ;;  %v2065_v41 = vpop.f32.mrb[11].mxu1 }
 0x406   :  { %v1968_v42 = vadd.f32 %v2063_v32, %v1893_v33  ;;  %v2028_v43 = vadd.f32 %v2027_v39, %v2026_v38  ;;  %v2066_v44 = vadd.f32 %v2065_v41, %v2064_v45 }
 0x408   :  { %1976 = vst [vmem:[%s3201_s7] sm:$0xff] %v1968_v42  ;;  %v1898_v46 = vadd.f32 %v2028_v43, %v1990_v28 }
 0x40a   :  { %v1973_v55 = vadd.f32 %v2066_v44, %v1898_v46 }
 0x40c   :  { %1977 = vst [vmem:[%s3201_s7 + $0x8] sm:$0xff] %v1973_v55 }
 0x40d   :  { %1982 = vsyncpa [#allocation3], 1 }
 0x40e   :  { %1983 = vsyncpa [#allocation5], 1 }
 0x40f   :  { %1984 = vsyncpa [#allocation8], 1 }
 0x410   :  { %1985 = vsyncpa [#allocation11], 1 }

</bundles_post_ra>
